<compile_context>
chip_gen: v7x
topology: tpu7x:2x2x1
jax: 0.10.0
libtpu: 0.0.40
codegen_flags: <defaults>
</compile_context>

<pallas_src>
import functools

import jax
import jax.numpy as jnp
from jax.experimental import pallas as pl
from jax.experimental.pallas import tpu as pltpu

LANE = 128


def mlp_kernel(x_ref, w1_ref, b1_ref, w2_ref, b2_ref, w3_ref, b3_ref,
               w4_ref, b4_ref, o_ref):
    # Layer 1: Linear (bf16 MXU inputs, f32 accumulate) + bias/ReLU in f32.
    h = jnp.dot(x_ref[...], w1_ref[...], preferred_element_type=jnp.float32)
    h = jnp.maximum(h + b1_ref[...], 0.0).astype(jnp.bfloat16)
    # Layer 2: Linear + ReLU
    h = jnp.dot(h, w2_ref[...], preferred_element_type=jnp.float32)
    h = jnp.maximum(h + b2_ref[...], 0.0).astype(jnp.bfloat16)
    # Layer 3: Linear + ReLU
    h = jnp.dot(h, w3_ref[...], preferred_element_type=jnp.float32)
    h = jnp.maximum(h + b3_ref[...], 0.0).astype(jnp.bfloat16)
    # Layer 4: Linear (no activation)
    out = jnp.dot(h, w4_ref[...], preferred_element_type=jnp.float32) + b4_ref[...]
    o_ref[...] = out.astype(o_ref.dtype)


def _round_up(x, m):
    return (x + m - 1) // m * m


def _pad2d(a, rows, cols):
    r, c = a.shape
    if r == rows and c == cols:
        return a
    return jnp.pad(a, ((0, rows - r), (0, cols - c)))


def _vmem_cap_bytes():
    try:
        return int(pltpu.get_tpu_info().vmem_capacity_bytes)
    except Exception:
        return 64 << 20  # conservative (v7x-sized) fallback


def _pick_tile_batch(batch):
    # Bigger tiles amortize per-step overhead; 16-row granularity matches the
    # native bf16 (16,128) tile.
    tb = min(512, _round_up(batch, 16))
    steps = -(-batch // tb)
    if steps > 1 and steps % 2 == 1:
        # Even step count so v7x's two TensorCores split the "parallel" grid
        # axis evenly; harmless on single-TC v5e/v6e.
        steps += 1
        tb = _round_up(-(-batch // steps), 16)
    return tb


def prepare_params(params):
    """One-time parameter prep (do NOT call per forward).

    Pads every feature dim to a 128-lane multiple and casts weights to bf16
    (MXU inputs) / biases to f32 (VPU math)."""
    n_in, n_hid = params["w1"].shape
    n_out = params["w4"].shape[1]
    n_in_p = _round_up(n_in, LANE)
    n_hid_p = _round_up(n_hid, LANE)
    n_out_p = _round_up(n_out, LANE)
    consts = (
        _pad2d(params["w1"], n_in_p, n_hid_p).astype(jnp.bfloat16),
        _pad2d(params["b1"], 1, n_hid_p).astype(jnp.float32),
        _pad2d(params["w2"], n_hid_p, n_hid_p).astype(jnp.bfloat16),
        _pad2d(params["b2"], 1, n_hid_p).astype(jnp.float32),
        _pad2d(params["w3"], n_hid_p, n_hid_p).astype(jnp.bfloat16),
        _pad2d(params["b3"], 1, n_hid_p).astype(jnp.float32),
        _pad2d(params["w4"], n_hid_p, n_out_p).astype(jnp.bfloat16),
        _pad2d(params["b4"], 1, n_out_p).astype(jnp.float32),
    )
    dims = dict(n_in=n_in, n_out=n_out,
                n_in_p=n_in_p, n_hid_p=n_hid_p, n_out_p=n_out_p)
    return consts, dims


@functools.lru_cache(maxsize=None)
def _build_forward(batch, n_in, n_out, n_in_p, n_hid_p, n_out_p, tile_batch,
                   out_dtype_name):
    """Build (once per shape signature) a jitted forward: pad x -> pallas_call
    -> slice.  Cached so repeated calls never re-trace or re-compile."""
    out_dtype = jnp.dtype(out_dtype_name)
    batch_p = _round_up(batch, tile_batch)
    grid = (batch_p // tile_batch,)

    const_shapes = [(n_in_p, n_hid_p), (1, n_hid_p),
                    (n_hid_p, n_hid_p), (1, n_hid_p),
                    (n_hid_p, n_hid_p), (1, n_hid_p),
                    (n_hid_p, n_out_p), (1, n_out_p)]
    # weights bf16 (2B), biases f32 (4B)
    const_bytes = sum(r * c * (2 if r > 1 else 4) for r, c in const_shapes)

    # Advisory cost hint for XLA's scheduler around the custom call.
    flops = 2 * batch_p * (n_in_p * n_hid_p + 2 * n_hid_p * n_hid_p
                           + n_hid_p * n_out_p)
    bytes_accessed = batch_p * n_in_p * 2 + const_bytes + batch_p * n_out_p * 4
    cost = pl.CostEstimate(flops=int(flops), transcendentals=0,
                           bytes_accessed=int(bytes_accessed))

    # VMEM budget: resident weights (possibly double-buffered by Mosaic),
    # double-buffered x/out tiles, plus headroom for live f32 intermediates.
    # Capped at 75% of the physical per-core VMEM (64 MiB v7x / 128 MiB
    # v5e & v6e) so there is pipeline/scratch headroom on every generation.
    tile_bytes = 2 * (tile_batch * n_in_p * 2) + 2 * (tile_batch * n_out_p * 4)
    scratch_bytes = 4 * tile_batch * n_hid_p * 4
    vmem_limit = int(min(int(0.75 * _vmem_cap_bytes()),
                         max(8 << 20,
                             2 * (2 * const_bytes + tile_bytes + scratch_bytes))))

    in_specs = [pl.BlockSpec((tile_batch, n_in_p), lambda i: (i, 0))]
    # Constant index_map -> identical (whole-array) block every grid step, so
    # the weights/biases stay resident in VMEM across the batch tiles.
    in_specs += [pl.BlockSpec(s, lambda i: (0, 0)) for s in const_shapes]
    out_spec = pl.BlockSpec((tile_batch, n_out_p), lambda i: (i, 0))

    call = pl.pallas_call(
        mlp_kernel,
        out_shape=jax.ShapeDtypeStruct((batch_p, n_out_p), jnp.float32),
        grid_spec=pltpu.PrefetchScalarGridSpec(
            num_scalar_prefetch=0,
            grid=grid,
            in_specs=in_specs,
            out_specs=out_spec,
        ),
        compiler_params=pltpu.CompilerParams(
            dimension_semantics=("parallel",),
            vmem_limit_bytes=vmem_limit),
        cost_estimate=cost,
    )

    def fwd(x, *consts):
        x_p = _pad2d(x, batch_p, n_in_p).astype(jnp.bfloat16)
        out_p = call(x_p, *consts)
        return out_p[:batch, :n_out].astype(out_dtype)

    return jax.jit(fwd)


def mlp_forward(x, prepared, *, tile_batch=None):
    """Pallas forward of the 4-layer MLP (Linear-ReLU x3 + Linear).

    x: (B, n_input) float32.  `prepared` = prepare_params(params)."""
    consts, dims = prepared
    batch, n_in = x.shape
    assert n_in == dims["n_in"], "input feature dim mismatch"
    if tile_batch is None:
        tile_batch = _pick_tile_batch(batch)
    assert tile_batch % 16 == 0, \
        "batch tile must be a multiple of 16 (native bf16 sublane tile)"
    fwd = _build_forward(batch, dims["n_in"], dims["n_out"], dims["n_in_p"],
                         dims["n_hid_p"], dims["n_out_p"], tile_batch,
                         jnp.dtype(x.dtype).name)
    return fwd(x, *consts)


def init_params(key, n_input, n_hidden, n_output, dtype=jnp.float32):
    """Deterministic init mimicking nn.Linear (uniform +-1/sqrt(fan_in)).

    Weights stored as (in, out) == transpose of PyTorch's (out, in)."""
    dims = [(n_input, n_hidden), (n_hidden, n_hidden),
            (n_hidden, n_hidden), (n_hidden, n_output)]
    params = {}
    for idx, (fan_in, fan_out) in enumerate(dims, start=1):
        key, kw, kb = jax.random.split(key, 3)
        bound = 1.0 / jnp.sqrt(jnp.array(fan_in, dtype))
        params[f"w{idx}"] = jax.random.uniform(
            kw, (fan_in, fan_out), dtype, minval=-bound, maxval=bound)
        params[f"b{idx}"] = jax.random.uniform(
            kb, (1, fan_out), dtype, minval=-bound, maxval=bound)
    return params


def reference_forward(x, params):
    """Pure-JAX reference using the same precision recipe as the kernel
    (bf16 matmul inputs, f32 accumulation / bias / ReLU)."""
    h = x
    for idx in (1, 2, 3):
        h = jnp.dot(h.astype(jnp.bfloat16),
                    params[f"w{idx}"].astype(jnp.bfloat16),
                    preferred_element_type=jnp.float32)
        h = jnp.maximum(h + params[f"b{idx}"], 0.0)
    return jnp.dot(h.astype(jnp.bfloat16),
                   params["w4"].astype(jnp.bfloat16),
                   preferred_element_type=jnp.float32) + params["b4"]


if __name__ == "__main__":
    key = jax.random.PRNGKey(0)
    # Small regressor sizes consistent with the module; batch chosen so the
    # padding/slicing path (500 -> 512 rows) is exercised.
    batch, n_input, n_hidden, n_output = 500, 16, 32, 4

    k_x, k_p = jax.random.split(key)
    x = jax.random.normal(k_x, (batch, n_input), jnp.float32)
    params = init_params(k_p, n_input, n_hidden, n_output)

    prepared = prepare_params(params)        # one-time pad + cast of constants

    out = mlp_forward(x, prepared)           # traces + compiles once (cached)
    out = mlp_forward(x, prepared)           # hot path: single cached jit call
    out = jax.block_until_ready(out)

    ref = reference_forward(x, params)
    assert out.shape == (batch, n_output)
    assert jnp.allclose(out, ref, atol=5e-3, rtol=5e-3), \
        float(jnp.max(jnp.abs(out - ref)))

    print("KERNEL_OK")
</pallas_src>

<mosaic_0001>
module attributes {stable_mosaic.version = 11 : i64} {
  func.func @mlp_kernel(%arg0: i32, %arg1: memref<512x128xbf16, #tpu.memory_space<vmem>>, %arg2: memref<128x128xbf16, #tpu.memory_space<vmem>>, %arg3: memref<1x128xf32, #tpu.memory_space<vmem>>, %arg4: memref<128x128xbf16, #tpu.memory_space<vmem>>, %arg5: memref<1x128xf32, #tpu.memory_space<vmem>>, %arg6: memref<128x128xbf16, #tpu.memory_space<vmem>>, %arg7: memref<1x128xf32, #tpu.memory_space<vmem>>, %arg8: memref<128x128xbf16, #tpu.memory_space<vmem>>, %arg9: memref<1x128xf32, #tpu.memory_space<vmem>>, %arg10: memref<512x128xf32, #tpu.memory_space<vmem>>) attributes {dimension_semantics = [#tpu.dimension_semantics<parallel>], iteration_bounds = array<i64: 1>, scalar_prefetch = 0 : i64, scratch_operands = 0 : i64, tpu.core_type = #tpu.core_type<tc>, window_params = [{transform_indices = @transform_0, window_bounds = array<i64: 512, 128>}, {pipeline_mode = #tpu.pipeline_mode<synchronous>, transform_indices = @transform_1, window_bounds = array<i64: 128, 128>}, {pipeline_mode = #tpu.pipeline_mode<synchronous>, transform_indices = @transform_2, window_bounds = array<i64: 1, 128>}, {pipeline_mode = #tpu.pipeline_mode<synchronous>, transform_indices = @transform_3, window_bounds = array<i64: 128, 128>}, {pipeline_mode = #tpu.pipeline_mode<synchronous>, transform_indices = @transform_4, window_bounds = array<i64: 1, 128>}, {pipeline_mode = #tpu.pipeline_mode<synchronous>, transform_indices = @transform_5, window_bounds = array<i64: 128, 128>}, {pipeline_mode = #tpu.pipeline_mode<synchronous>, transform_indices = @transform_6, window_bounds = array<i64: 1, 128>}, {pipeline_mode = #tpu.pipeline_mode<synchronous>, transform_indices = @transform_7, window_bounds = array<i64: 128, 128>}, {pipeline_mode = #tpu.pipeline_mode<synchronous>, transform_indices = @transform_8, window_bounds = array<i64: 1, 128>}, {transform_indices = @transform_9, window_bounds = array<i64: 512, 128>}]} {
    %c0 = arith.constant 0 : index
    %c0_0 = arith.constant 0 : index
    %0 = vector.load %arg1[%c0, %c0_0] : memref<512x128xbf16, #tpu.memory_space<vmem>>, vector<512x128xbf16>
    %c0_1 = arith.constant 0 : index
    %c0_2 = arith.constant 0 : index
    %1 = vector.load %arg2[%c0_1, %c0_2] : memref<128x128xbf16, #tpu.memory_space<vmem>>, vector<128x128xbf16>
    %cst = arith.constant dense<0.000000e+00> : vector<512x128xf32>
    %2 = tpu.matmul %0, %1, %cst {dimension_numbers = #tpu.dot_dimension_numbers<[1], [0], [0], [1], [0, 0, 1, 1], [], []>} : vector<512x128xbf16>, vector<128x128xbf16>, vector<512x128xf32> -> vector<512x128xf32>
    %c0_3 = arith.constant 0 : index
    %c0_4 = arith.constant 0 : index
    %3 = vector.load %arg3[%c0_3, %c0_4] : memref<1x128xf32, #tpu.memory_space<vmem>>, vector<1x128xf32>
    %4 = vector.broadcast %3 : vector<1x128xf32> to vector<512x128xf32>
    %5 = arith.addf %2, %4 : vector<512x128xf32>
    %cst_5 = arith.constant 0.000000e+00 : f32
    %6 = vector.broadcast %cst_5 : f32 to vector<512x128xf32>
    %7 = arith.maximumf %5, %6 : vector<512x128xf32>
    %8 = arith.truncf %7 : vector<512x128xf32> to vector<512x128xbf16>
    %c0_6 = arith.constant 0 : index
    %c0_7 = arith.constant 0 : index
    %9 = vector.load %arg4[%c0_6, %c0_7] : memref<128x128xbf16, #tpu.memory_space<vmem>>, vector<128x128xbf16>
    %cst_8 = arith.constant dense<0.000000e+00> : vector<512x128xf32>
    %10 = tpu.matmul %8, %9, %cst_8 {dimension_numbers = #tpu.dot_dimension_numbers<[1], [0], [0], [1], [0, 0, 1, 1], [], []>} : vector<512x128xbf16>, vector<128x128xbf16>, vector<512x128xf32> -> vector<512x128xf32>
    %c0_9 = arith.constant 0 : index
    %c0_10 = arith.constant 0 : index
    %11 = vector.load %arg5[%c0_9, %c0_10] : memref<1x128xf32, #tpu.memory_space<vmem>>, vector<1x128xf32>
    %12 = vector.broadcast %11 : vector<1x128xf32> to vector<512x128xf32>
    %13 = arith.addf %10, %12 : vector<512x128xf32>
    %cst_11 = arith.constant 0.000000e+00 : f32
    %14 = vector.broadcast %cst_11 : f32 to vector<512x128xf32>
    %15 = arith.maximumf %13, %14 : vector<512x128xf32>
    %16 = arith.truncf %15 : vector<512x128xf32> to vector<512x128xbf16>
    %c0_12 = arith.constant 0 : index
    %c0_13 = arith.constant 0 : index
    %17 = vector.load %arg6[%c0_12, %c0_13] : memref<128x128xbf16, #tpu.memory_space<vmem>>, vector<128x128xbf16>
    %cst_14 = arith.constant dense<0.000000e+00> : vector<512x128xf32>
    %18 = tpu.matmul %16, %17, %cst_14 {dimension_numbers = #tpu.dot_dimension_numbers<[1], [0], [0], [1], [0, 0, 1, 1], [], []>} : vector<512x128xbf16>, vector<128x128xbf16>, vector<512x128xf32> -> vector<512x128xf32>
    %c0_15 = arith.constant 0 : index
    %c0_16 = arith.constant 0 : index
    %19 = vector.load %arg7[%c0_15, %c0_16] : memref<1x128xf32, #tpu.memory_space<vmem>>, vector<1x128xf32>
    %20 = vector.broadcast %19 : vector<1x128xf32> to vector<512x128xf32>
    %21 = arith.addf %18, %20 : vector<512x128xf32>
    %cst_17 = arith.constant 0.000000e+00 : f32
    %22 = vector.broadcast %cst_17 : f32 to vector<512x128xf32>
    %23 = arith.maximumf %21, %22 : vector<512x128xf32>
    %24 = arith.truncf %23 : vector<512x128xf32> to vector<512x128xbf16>
    %c0_18 = arith.constant 0 : index
    %c0_19 = arith.constant 0 : index
    %25 = vector.load %arg8[%c0_18, %c0_19] : memref<128x128xbf16, #tpu.memory_space<vmem>>, vector<128x128xbf16>
    %cst_20 = arith.constant dense<0.000000e+00> : vector<512x128xf32>
    %26 = tpu.matmul %24, %25, %cst_20 {dimension_numbers = #tpu.dot_dimension_numbers<[1], [0], [0], [1], [0, 0, 1, 1], [], []>} : vector<512x128xbf16>, vector<128x128xbf16>, vector<512x128xf32> -> vector<512x128xf32>
    %c0_21 = arith.constant 0 : index
    %c0_22 = arith.constant 0 : index
    %27 = vector.load %arg9[%c0_21, %c0_22] : memref<1x128xf32, #tpu.memory_space<vmem>>, vector<1x128xf32>
    %28 = vector.broadcast %27 : vector<1x128xf32> to vector<512x128xf32>
    %29 = arith.addf %26, %28 : vector<512x128xf32>
    %c0_23 = arith.constant 0 : index
    %c0_24 = arith.constant 0 : index
    %30 = vector.load %arg10[%c0_23, %c0_24] : memref<512x128xf32, #tpu.memory_space<vmem>>, vector<512x128xf32>
    tpu.vector_store %arg10[%c0_23, %c0_24], %29 {strides = array<i32>} : memref<512x128xf32, #tpu.memory_space<vmem>>, vector<512x128xf32>,
    return
  }
  func.func @transform_0(%arg0: i32) -> (i32, i32) {
    %c0_i32 = arith.constant 0 : i32
    %c0_i32_0 = arith.constant 0 : i32
    return %arg0, %c0_i32 : i32, i32
  }
  func.func @transform_1(%arg0: i32) -> (i32, i32) {
    %c0_i32 = arith.constant 0 : i32
    %c0_i32_0 = arith.constant 0 : i32
    %c0_i32_1 = arith.constant 0 : i32
    return %c0_i32, %c0_i32_0 : i32, i32
  }
  func.func @transform_2(%arg0: i32) -> (i32, i32) {
    %c0_i32 = arith.constant 0 : i32
    %c0_i32_0 = arith.constant 0 : i32
    %c0_i32_1 = arith.constant 0 : i32
    return %c0_i32, %c0_i32_0 : i32, i32
  }
  func.func @transform_3(%arg0: i32) -> (i32, i32) {
    %c0_i32 = arith.constant 0 : i32
    %c0_i32_0 = arith.constant 0 : i32
    %c0_i32_1 = arith.constant 0 : i32
    return %c0_i32, %c0_i32_0 : i32, i32
  }
  func.func @transform_4(%arg0: i32) -> (i32, i32) {
    %c0_i32 = arith.constant 0 : i32
    %c0_i32_0 = arith.constant 0 : i32
    %c0_i32_1 = arith.constant 0 : i32
    return %c0_i32, %c0_i32_0 : i32, i32
  }
  func.func @transform_5(%arg0: i32) -> (i32, i32) {
    %c0_i32 = arith.constant 0 : i32
    %c0_i32_0 = arith.constant 0 : i32
    %c0_i32_1 = arith.constant 0 : i32
    return %c0_i32, %c0_i32_0 : i32, i32
  }
  func.func @transform_6(%arg0: i32) -> (i32, i32) {
    %c0_i32 = arith.constant 0 : i32
    %c0_i32_0 = arith.constant 0 : i32
    %c0_i32_1 = arith.constant 0 : i32
    return %c0_i32, %c0_i32_0 : i32, i32
  }
  func.func @transform_7(%arg0: i32) -> (i32, i32) {
    %c0_i32 = arith.constant 0 : i32
    %c0_i32_0 = arith.constant 0 : i32
    %c0_i32_1 = arith.constant 0 : i32
    return %c0_i32, %c0_i32_0 : i32, i32
  }
  func.func @transform_8(%arg0: i32) -> (i32, i32) {
    %c0_i32 = arith.constant 0 : i32
    %c0_i32_0 = arith.constant 0 : i32
    %c0_i32_1 = arith.constant 0 : i32
    return %c0_i32, %c0_i32_0 : i32, i32
  }
  func.func @transform_9(%arg0: i32) -> (i32, i32) {
    %c0_i32 = arith.constant 0 : i32
    %c0_i32_0 = arith.constant 0 : i32
    return %arg0, %c0_i32 : i32, i32
  }
}

</mosaic_0001>

<bundles_post_ra>
// kernel: fwd.1
= control target key start
LH: loop header
LB: loop body
LE: loop exit
PB: predicated region body
PF: predicated region fallthrough
CT: control target
= control target key end

     0   :  { %s3407_s1 = inlined_call_operand.vmem [shape: bf16[128,128], index: 1, kind: input, shape index: {}]   ;;  %s3408_s0 = inlined_call_operand.vmem [shape: bf16[512,128], index: 0, kind: input, shape index: {}]   ;;  %s3409_s3 = inlined_call_operand.vmem [shape: bf16[128,128], index: 3, kind: input, shape index: {}]   ;;  %s3410_s5 = inlined_call_operand.vmem [shape: bf16[128,128], index: 5, kind: input, shape index: {}]   ;;  %s3411_s2 = inlined_call_operand.vmem [shape: f32[1,128], index: 2, kind: input, shape index: {}]   ;;  %s3412_s7 = inlined_call_operand.vmem [shape: bf16[128,128], index: 7, kind: input, shape index: {}]   ;;  %s3413_s4 = inlined_call_operand.vmem [shape: f32[1,128], index: 4, kind: input, shape index: {}]   ;;  %s3414_s6 = inlined_call_operand.vmem [shape: f32[1,128], index: 6, kind: input, shape index: {}]   ;;  %s3415_s8 = inlined_call_operand.vmem [shape: f32[1,128], index: 8, kind: input, shape index: {}]   ;;  %s3416_s9 = inlined_call_operand.vmem [shape: f32[512,128], index: 9, kind: output, shape index: {}]  }
   0x1   :  { %v2633_v0 = vld [vmem:[%s3407_s1] sm:$0xff]   ;;  %v2634_v1 = vld [vmem:[%s3407_s1 + $0x8] sm:$0xff]   ;;  %v2635_v2 = vld [vmem:[%s3407_s1 + $0x10] sm:$0xff]  }
   0x2   :  { %2313 = vmatprep.subr.bf16.mxu0 %v2633_v0  ;;  %v2636_v3 = vld [vmem:[%s3407_s1 + $0x18] sm:$0xff]   ;;  %v2641_v4 = vld [vmem:[%s3408_s0] sm:$0xff]   ;;  %v2638_v6 = vld [vmem:[%s3407_s1 + $0x28] sm:$0xff]  }
   0x3   :  { %2314 = vmatpush3.bf16.msra.mxu0 %v2633_v0  ;;  %2329 = vmatprep.mubr.bf16.mxu0 %v2641_v4  ;;  %v2637_v5 = vld [vmem:[%s3407_s1 + $0x20] sm:$0xff]   ;;  %v2639_v7 = vld [vmem:[%s3407_s1 + $0x30] sm:$0xff]   ;;  %v2640_v8 = vld [vmem:[%s3407_s1 + $0x38] sm:$0xff]  }
   0x4   :  { %2315 = vmatprep.subr.bf16.mxu0 %v2634_v1  ;;  %v2642_v9 = vld [vmem:[%s3408_s0 + $0x8] sm:$0xff]   ;;  %v2643_v10 = vld [vmem:[%s3408_s0 + $0x10] sm:$0xff]   ;;  %v2644_v11 = vld [vmem:[%s3408_s0 + $0x18] sm:$0xff]  }
   0x5   :  { %v2645_v12 = vld [vmem:[%s3408_s0 + $0x20] sm:$0xff]   ;;  %v2674_v14 = vld [vmem:[%s3409_s3 + $0x8] sm:$0xff]   ;;  %v2675_v15 = vld [vmem:[%s3409_s3 + $0x10] sm:$0xff]  }
   0x6   :  { %v2673_v13 = vld [vmem:[%s3409_s3] sm:$0xff]   ;;  %v2646_v16 = vld [vmem:[%s3408_s0 + $0x28] sm:$0xff]   ;;  %v2647_v17 = vld [vmem:[%s3408_s0 + $0x30] sm:$0xff]  }
   0x7   :  { %2316 = vmatpush3.bf16.msra.mxu0 %v2634_v1  ;;  %2393 = vmatprep.subr.bf16.mxu1 %v2673_v13  ;;  %v2676_v18 = vld [vmem:[%s3409_s3 + $0x18] sm:$0xff]   ;;  %v2677_v19 = vld [vmem:[%s3409_s3 + $0x20] sm:$0xff]   ;;  %v2678_v22 = vld [vmem:[%s3409_s3 + $0x28] sm:$0xff]  }
   0x8   :  { %2317 = vmatprep.subr.bf16.mxu0 %v2635_v2  ;;  %2394 = vmatpush3.bf16.msra.mxu1 %v2673_v13  ;;  %v2648_v20 = vld [vmem:[%s3408_s0 + $0x38] sm:$0xff]   ;;  %v2649_v21 = vld [vmem:[%s3408_s0 + $0x40] sm:$0xff]   ;;  %v2650_v23 = vld [vmem:[%s3408_s0 + $0x48] sm:$0xff]  }
   0x9   :  { %2395 = vmatprep.subr.bf16.mxu1 %v2674_v14  ;;  %v2651_v24 = vld [vmem:[%s3408_s0 + $0x50] sm:$0xff]   ;;  %v2652_v25 = vld [vmem:[%s3408_s0 + $0x58] sm:$0xff]   ;;  %v2653_v26 = vld [vmem:[%s3408_s0 + $0x60] sm:$0xff]  }
   0xa   :  { %v2654_v27 = vld [vmem:[%s3408_s0 + $0x68] sm:$0xff]   ;;  %v2655_v28 = vld [vmem:[%s3408_s0 + $0x70] sm:$0xff]   ;;  %v2656_v29 = vld [vmem:[%s3408_s0 + $0x78] sm:$0xff]  }
   0xb   :  { %2318 = vmatpush3.bf16.msra.mxu0 %v2635_v2  ;;  %v2657_v30 = vld [vmem:[%s3408_s0 + $0x80] sm:$0xff]   ;;  %v2658_v31 = vld [vmem:[%s3408_s0 + $0x88] sm:$0xff]   ;;  %v2659_v32 = vld [vmem:[%s3408_s0 + $0x90] sm:$0xff]  }
   0xc   :  { %2319 = vmatprep.subr.bf16.mxu0 %v2636_v3  ;;  %2396 = vmatpush3.bf16.msra.mxu1 %v2674_v14  ;;  %v2660_v33 = vld [vmem:[%s3408_s0 + $0x98] sm:$0xff]   ;;  %v2661_v34 = vld [vmem:[%s3408_s0 + $0xa0] sm:$0xff]   ;;  %v2662_v35 = vld [vmem:[%s3408_s0 + $0xa8] sm:$0xff]  }
   0xd   :  { %2397 = vmatprep.subr.bf16.mxu1 %v2675_v15  ;;  %v2663_v36 = vld [vmem:[%s3408_s0 + $0xb0] sm:$0xff]   ;;  %v2664_v37 = vld [vmem:[%s3408_s0 + $0xb8] sm:$0xff]   ;;  %v2665_v39 = vld [vmem:[%s3408_s0 + $0xc0] sm:$0xff]  }
   0xe   :  { %v2679_v38 = vld [vmem:[%s3409_s3 + $0x30] sm:$0xff]   ;;  %v2680_v40 = vld [vmem:[%s3409_s3 + $0x38] sm:$0xff]   ;;  %v2666_v41 = vld [vmem:[%s3408_s0 + $0xc8] sm:$0xff]  }
   0xf   :  { %2320 = vmatpush3.bf16.msra.mxu0 %v2636_v3  ;;  %v2667_v42 = vld [vmem:[%s3408_s0 + $0xd0] sm:$0xff]   ;;  %v2668_v43 = vld [vmem:[%s3408_s0 + $0xd8] sm:$0xff]   ;;  %v2669_v44 = vld [vmem:[%s3408_s0 + $0xe0] sm:$0xff]  }
  0x10   :  { %2321 = vmatprep.subr.bf16.mxu0 %v2637_v5  ;;  %2398 = vmatpush3.bf16.msra.mxu1 %v2675_v15  ;;  %v2670_v45 = vld [vmem:[%s3408_s0 + $0xe8] sm:$0xff]   ;;  %v2671_v46 = vld [vmem:[%s3408_s0 + $0xf0] sm:$0xff]   ;;  %v2672_v47 = vld [vmem:[%s3408_s0 + $0xf8] sm:$0xff]  }
  0x11   :  { %2399 = vmatprep.subr.bf16.mxu1 %v2676_v18  ;;  %v2681_v48 = vld [vmem:[%s3410_s5] sm:$0xff]   ;;  %v2682_v49 = vld [vmem:[%s3410_s5 + $0x8] sm:$0xff]   ;;  %v2683_v58 = vld [vmem:[%s3410_s5 + $0x10] sm:$0xff]  }
  0x12   :  { %v2900_v50 = vld [vmem:[%s3411_s2] ss:$0 sm:$0xff]  ;;  %v2684_v59 = vld [vmem:[%s3410_s5 + $0x18] sm:$0xff]  }
  0x13   :  { %2322 = vmatpush3.bf16.msra.mxu0 %v2637_v5  ;;  %v2685_v2 = vld [vmem:[%s3410_s5 + $0x20] sm:$0xff]  }
  0x14   :  { %2323 = vmatprep.subr.bf16.mxu0 %v2638_v6  ;;  %2400 = vmatpush3.bf16.msra.mxu1 %v2676_v18  ;;  %v2687_v18 = vld [vmem:[%s3410_s5 + $0x30] sm:$0xff]  }
  0x15   :  { %2401 = vmatprep.subr.bf16.mxu1 %v2677_v19 }
  0x17   :  { %2324 = vmatpush3.bf16.msra.mxu0 %v2638_v6 }
  0x18   :  { %2325 = vmatprep.subr.bf16.mxu0 %v2639_v7  ;;  %2402 = vmatpush3.bf16.msra.mxu1 %v2677_v19 }
  0x19   :  { %2403 = vmatprep.subr.bf16.mxu1 %v2678_v22 }
  0x1b   :  { %2326 = vmatpush3.bf16.msra.mxu0 %v2639_v7 }
  0x1c   :  { %2327 = vmatprep.subr.bf16.mxu0 %v2640_v8  ;;  %2404 = vmatpush3.bf16.msra.mxu1 %v2678_v22 }
  0x1d   :  { %2405 = vmatprep.subr.bf16.mxu1 %v2679_v38 }
  0x1f   :  { %2328 = vmatpush3.bf16.msra.mxu0 %v2640_v8 }
  0x20   :  { %2406 = vmatpush3.bf16.msra.mxu1 %v2679_v38  ;;  %2473 = vmatprep.subr.bf16.mxu0 %v2681_v48 }
  0x21   :  { %2407 = vmatprep.subr.bf16.mxu1 %v2680_v40 }
  0x22   :  { %2330 = vmatmul.mubr.bf16.vlgmr.msra.gmra.mrb[0].mxu0 %v2642_v9 }
  0x23   :  { %2333 = vmatprep.mubr.bf16.mxu0 %v2643_v10  ;;  %2474 = vmatpush3.bf16.msra.mxu0 %v2681_v48 }
  0x24   :  { %2408 = vmatpush3.bf16.msra.mxu1 %v2680_v40  ;;  %2475 = vmatprep.subr.bf16.mxu0 %v2682_v49 }
  0x27   :  { %2476 = vmatpush3.bf16.msra.mxu0 %v2682_v49 }
  0x28   :  { %2477 = vmatprep.subr.bf16.mxu0 %v2683_v58 }
  0x2a   :  { %2334 = vmatmul.mubr.bf16.gmra.mrb[4].mxu0 %v2644_v11  ;;  %v2686_v11 = vld [vmem:[%s3410_s5 + $0x28] sm:$0xff]  }
  0x2b   :  { %2337 = vmatprep.mubr.bf16.mxu0 %v2645_v12  ;;  %2478 = vmatpush3.bf16.msra.mxu0 %v2683_v58 }
  0x2c   :  { %2479 = vmatprep.subr.bf16.mxu0 %v2684_v59 }
  0x2f   :  { %2480 = vmatpush3.bf16.msra.mxu0 %v2684_v59 }
  0x30   :  { %2481 = vmatprep.subr.bf16.mxu0 %v2685_v2 }
  0x32   :  { %2338 = vmatmul.mubr.bf16.gmra.mrb[8].mxu0 %v2646_v16 }
  0x33   :  { %2341 = vmatprep.mubr.bf16.mxu0 %v2647_v17  ;;  %2482 = vmatpush3.bf16.msra.mxu0 %v2685_v2 }
  0x34   :  { %2483 = vmatprep.subr.bf16.mxu0 %v2686_v11 }
  0x37   :  { %2484 = vmatpush3.bf16.msra.mxu0 %v2686_v11 }
  0x38   :  { %2485 = vmatprep.subr.bf16.mxu0 %v2687_v18 }
  0x3a   :  { %2342 = vmatmul.mubr.bf16.gmra.mrb[12].mxu0 %v2648_v20 }
  0x3b   :  { %2345 = vmatprep.mubr.bf16.mxu0 %v2649_v21  ;;  %2486 = vmatpush3.bf16.msra.mxu0 %v2687_v18 }
  0x42   :  { %2346 = vmatmul.mubr.bf16.gmra.mrb[16].mxu0 %v2650_v23 }
  0x43   :  { %2349 = vmatprep.mubr.bf16.mxu0 %v2651_v24 }
  0x4a   :  { %2350 = vmatmul.mubr.bf16.gmra.mrb[20].mxu0 %v2652_v25 }
  0x4b   :  { %2353 = vmatprep.mubr.bf16.mxu0 %v2653_v26 }
  0x52   :  { %2354 = vmatmul.mubr.bf16.gmra.mrb[24].mxu0 %v2654_v27  ;;  %v2688_v27 = vld [vmem:[%s3410_s5 + $0x38] sm:$0xff]  }
  0x53   :  { %2357 = vmatprep.mubr.bf16.mxu0 %v2655_v28  ;;  %2487 = vmatprep.subr.bf16.mxu0 %v2688_v27 }
  0x54   :  { %2488 = vmatpush3.bf16.msra.mxu0 %v2688_v27 }
  0x5a   :  { %2358 = vmatmul.mubr.bf16.gmra.mrb[28].mxu0 %v2656_v29 }
  0x5b   :  { %2361 = vmatprep.mubr.bf16.mxu0 %v2657_v30 }
  0x62   :  { %2362 = vmatmul.mubr.bf16.gmra.mrb[32].mxu0 %v2658_v31 }
  0x63   :  { %2365 = vmatprep.mubr.bf16.mxu0 %v2659_v32 }
  0x6a   :  { %2366 = vmatmul.mubr.bf16.gmra.mrb[36].mxu0 %v2660_v33 }
  0x6b   :  { %2369 = vmatprep.mubr.bf16.mxu0 %v2661_v34 }
  0x72   :  { %2370 = vmatmul.mubr.bf16.gmra.mrb[40].mxu0 %v2662_v35 }
  0x73   :  { %2373 = vmatprep.mubr.bf16.mxu0 %v2663_v36 }
  0x7a   :  { %2374 = vmatmul.mubr.bf16.gmra.mrb[44].mxu0 %v2664_v37 }
  0x7b   :  { %2377 = vmatprep.mubr.bf16.mxu0 %v2665_v39 }
  0x82   :  { %2378 = vmatmul.mubr.bf16.gmra.mrb[48].mxu0 %v2666_v41 }
  0x83   :  { %2381 = vmatprep.mubr.bf16.mxu0 %v2667_v42 }
  0x8a   :  { %2382 = vmatmul.mubr.bf16.gmra.mrb[52].mxu0 %v2668_v43 }
  0x8b   :  { %2385 = vmatprep.mubr.bf16.mxu0 %v2669_v44 }
  0x92   :  { %2386 = vmatmul.mubr.bf16.gmra.mrb[56].mxu0 %v2670_v45 }
  0x93   :  { %2389 = vmatprep.mubr.bf16.mxu0 %v2671_v46 }
  0x9a   :  { %2390 = vmatmul.mubr.bf16.gmra.mrb[60].mxu0 %v2672_v47 }
  0xf5   :  { %v2331_v51 = vpop.f32.mrb[0].mxu0 }
  0xf6   :  { %v403_v52 = vadd.f32 %v2331_v51, %v2900_v50  ;;  %v394_v53 = vpop.f32.mrb[1].mxu0 }
  0xf7   :  { %v395_v54 = vadd.f32 %v2900_v50, %v394_v53  ;;  %v2332_v55 = vpop.f32.mrb[2].mxu0 }
  0xf8   :  { %v406_v56 = vadd.f32 %v2332_v55, %v2900_v50  ;;  %v397_v57 = vpop.f32.mrb[3].mxu0  ;;  %v651_v61 = vmax.f32 %v403_v52, 0.0 }
  0xf9   :  { %v398_v60 = vadd.f32 %v2900_v50, %v397_v57  ;;  %v649_v63 = vmax.f32 %v395_v54, 0.0 }
  0xfa   :  { %v652_v62 = vmax.f32 %v406_v56, 0.0 }
  0xfb   :  { %v650_v0 = vmax.f32 %v398_v60, 0.0 }
  0xfc   :  { %v714_v1 = vpack.c.bf16 %v652_v62, %v651_v61 }
  0xfd   :  { %v2335_v3 = vpop.f32.mrb[4].mxu0  ;;  %v713_v4 = vpack.c.bf16 %v650_v0, %v649_v63 }
  0xfe   :  { %v419_v5 = vadd.f32 %v2335_v3, %v2900_v50  ;;  %v410_v6 = vpop.f32.mrb[5].mxu0 }
  0xff   :  { %v411_v7 = vadd.f32 %v2900_v50, %v410_v6  ;;  %v2336_v8 = vpop.f32.mrb[6].mxu0  ;;  %2409 = vmatprep.mubr.bf16.mxu1 %v713_v4 }
 0x100   :  { %v422_v9 = vadd.f32 %v2336_v8, %v2900_v50  ;;  %v413_v10 = vpop.f32.mrb[7].mxu0  ;;  %2410 = vmatmul.mubr.bf16.vlgmr.msra.gmra.mrb[0].mxu1 %v714_v1  ;;  %v655_v13 = vmax.f32 %v419_v5, 0.0 }
 0x101   :  { %v414_v12 = vadd.f32 %v2900_v50, %v413_v10  ;;  %v653_v15 = vmax.f32 %v411_v7, 0.0 }
 0x102   :  { %v656_v14 = vmax.f32 %v422_v9, 0.0 }
 0x103   :  { %v654_v16 = vmax.f32 %v414_v12, 0.0 }
 0x104   :  { %v716_v17 = vpack.c.bf16 %v656_v14, %v655_v13 }
 0x105   :  { %v715_v19 = vpack.c.bf16 %v654_v16, %v653_v15  ;;  %v2339_v20 = vpop.f32.mrb[8].mxu0 }
 0x106   :  { %v435_v21 = vadd.f32 %v2339_v20, %v2900_v50  ;;  %v426_v22 = vpop.f32.mrb[9].mxu0 }
 0x107   :  { %v427_v23 = vadd.f32 %v2900_v50, %v426_v22  ;;  %v2340_v24 = vpop.f32.mrb[10].mxu0  ;;  %2413 = vmatprep.mubr.bf16.mxu1 %v715_v19 }
 0x108   :  { %v438_v25 = vadd.f32 %v2340_v24, %v2900_v50  ;;  %v429_v26 = vpop.f32.mrb[11].mxu0  ;;  %2414 = vmatmul.mubr.bf16.gmra.mrb[4].mxu1 %v716_v17  ;;  %v659_v29 = vmax.f32 %v435_v21, 0.0 }
 0x109   :  { %v430_v28 = vadd.f32 %v2900_v50, %v429_v26  ;;  %v657_v31 = vmax.f32 %v427_v23, 0.0 }
 0x10a   :  { %v660_v30 = vmax.f32 %v438_v25, 0.0 }
 0x10b   :  { %v658_v32 = vmax.f32 %v430_v28, 0.0 }
 0x10c   :  { %v718_v33 = vpack.c.bf16 %v660_v30, %v659_v29 }
 0x10d   :  { %v717_v34 = vpack.c.bf16 %v658_v32, %v657_v31  ;;  %v2343_v35 = vpop.f32.mrb[12].mxu0 }
 0x10e   :  { %v451_v36 = vadd.f32 %v2343_v35, %v2900_v50  ;;  %v442_v37 = vpop.f32.mrb[13].mxu0 }
 0x10f   :  { %v443_v38 = vadd.f32 %v2900_v50, %v442_v37  ;;  %v2344_v39 = vpop.f32.mrb[14].mxu0  ;;  %2417 = vmatprep.mubr.bf16.mxu1 %v717_v34 }
 0x110   :  { %v454_v40 = vadd.f32 %v2344_v39, %v2900_v50  ;;  %v445_v41 = vpop.f32.mrb[15].mxu0  ;;  %2418 = vmatmul.mubr.bf16.gmra.mrb[8].mxu1 %v718_v33  ;;  %v663_v43 = vmax.f32 %v451_v36, 0.0 }
 0x111   :  { %v446_v42 = vadd.f32 %v2900_v50, %v445_v41  ;;  %v661_v45 = vmax.f32 %v443_v38, 0.0 }
 0x112   :  { %v664_v44 = vmax.f32 %v454_v40, 0.0 }
 0x113   :  { %v662_v46 = vmax.f32 %v446_v42, 0.0 }
 0x114   :  { %v720_v47 = vpack.c.bf16 %v664_v44, %v663_v43 }
 0x115   :  { %v719_v48 = vpack.c.bf16 %v662_v46, %v661_v45  ;;  %v2347_v49 = vpop.f32.mrb[16].mxu0 }
 0x116   :  { %v467_v51 = vadd.f32 %v2347_v49, %v2900_v50  ;;  %v458_v52 = vpop.f32.mrb[17].mxu0 }
 0x117   :  { %v459_v53 = vadd.f32 %v2900_v50, %v458_v52  ;;  %v2348_v54 = vpop.f32.mrb[18].mxu0  ;;  %2421 = vmatprep.mubr.bf16.mxu1 %v719_v48 }
 0x118   :  { %v470_v55 = vadd.f32 %v2348_v54, %v2900_v50  ;;  %v461_v56 = vpop.f32.mrb[19].mxu0  ;;  %2422 = vmatmul.mubr.bf16.gmra.mrb[12].mxu1 %v720_v47  ;;  %v667_v58 = vmax.f32 %v467_v51, 0.0 }
 0x119   :  { %v462_v57 = vadd.f32 %v2900_v50, %v461_v56  ;;  %v665_v60 = vmax.f32 %v459_v53, 0.0 }
 0x11a   :  { %v668_v59 = vmax.f32 %v470_v55, 0.0 }
 0x11b   :  { %v666_v61 = vmax.f32 %v462_v57, 0.0 }
 0x11c   :  { %v722_v62 = vpack.c.bf16 %v668_v59, %v667_v58 }
 0x11d   :  { %v721_v63 = vpack.c.bf16 %v666_v61, %v665_v60  ;;  %v2351_v0 = vpop.f32.mrb[20].mxu0 }
 0x11e   :  { %v483_v1 = vadd.f32 %v2351_v0, %v2900_v50  ;;  %v474_v2 = vpop.f32.mrb[21].mxu0 }
 0x11f   :  { %v475_v3 = vadd.f32 %v2900_v50, %v474_v2  ;;  %v2352_v4 = vpop.f32.mrb[22].mxu0  ;;  %2425 = vmatprep.mubr.bf16.mxu1 %v721_v63 }
 0x120   :  { %v486_v5 = vadd.f32 %v2352_v4, %v2900_v50  ;;  %v477_v6 = vpop.f32.mrb[23].mxu0  ;;  %2426 = vmatmul.mubr.bf16.gmra.mrb[16].mxu1 %v722_v62  ;;  %v671_v8 = vmax.f32 %v483_v1, 0.0 }
 0x121   :  { %v478_v7 = vadd.f32 %v2900_v50, %v477_v6  ;;  %v669_v10 = vmax.f32 %v475_v3, 0.0 }
 0x122   :  { %v672_v9 = vmax.f32 %v486_v5, 0.0 }
 0x123   :  { %v670_v11 = vmax.f32 %v478_v7, 0.0 }
 0x124   :  { %v724_v12 = vpack.c.bf16 %v672_v9, %v671_v8 }
 0x125   :  { %v723_v13 = vpack.c.bf16 %v670_v11, %v669_v10  ;;  %v2355_v14 = vpop.f32.mrb[24].mxu0 }
 0x126   :  { %v499_v15 = vadd.f32 %v2355_v14, %v2900_v50  ;;  %v490_v16 = vpop.f32.mrb[25].mxu0 }
 0x127   :  { %v491_v17 = vadd.f32 %v2900_v50, %v490_v16  ;;  %v2356_v18 = vpop.f32.mrb[26].mxu0  ;;  %2429 = vmatprep.mubr.bf16.mxu1 %v723_v13 }
 0x128   :  { %v502_v19 = vadd.f32 %v2356_v18, %v2900_v50  ;;  %v493_v20 = vpop.f32.mrb[27].mxu0  ;;  %2430 = vmatmul.mubr.bf16.gmra.mrb[20].mxu1 %v724_v12  ;;  %v675_v22 = vmax.f32 %v499_v15, 0.0 }
 0x129   :  { %v494_v21 = vadd.f32 %v2900_v50, %v493_v20  ;;  %v673_v24 = vmax.f32 %v491_v17, 0.0 }
 0x12a   :  { %v676_v23 = vmax.f32 %v502_v19, 0.0 }
 0x12b   :  { %v674_v25 = vmax.f32 %v494_v21, 0.0 }
 0x12c   :  { %v726_v26 = vpack.c.bf16 %v676_v23, %v675_v22 }
 0x12d   :  { %v725_v27 = vpack.c.bf16 %v674_v25, %v673_v24  ;;  %v2359_v28 = vpop.f32.mrb[28].mxu0 }
 0x12e   :  { %v515_v29 = vadd.f32 %v2359_v28, %v2900_v50  ;;  %v506_v30 = vpop.f32.mrb[29].mxu0 }
 0x12f   :  { %v507_v31 = vadd.f32 %v2900_v50, %v506_v30  ;;  %v2360_v32 = vpop.f32.mrb[30].mxu0  ;;  %2433 = vmatprep.mubr.bf16.mxu1 %v725_v27 }
 0x130   :  { %v518_v33 = vadd.f32 %v2360_v32, %v2900_v50  ;;  %v509_v34 = vpop.f32.mrb[31].mxu0  ;;  %2434 = vmatmul.mubr.bf16.gmra.mrb[24].mxu1 %v726_v26  ;;  %v679_v36 = vmax.f32 %v515_v29, 0.0 }
 0x131   :  { %v510_v35 = vadd.f32 %v2900_v50, %v509_v34  ;;  %v677_v38 = vmax.f32 %v507_v31, 0.0 }
 0x132   :  { %v680_v37 = vmax.f32 %v518_v33, 0.0 }
 0x133   :  { %v678_v39 = vmax.f32 %v510_v35, 0.0 }
 0x134   :  { %v728_v40 = vpack.c.bf16 %v680_v37, %v679_v36 }
 0x135   :  { %v727_v41 = vpack.c.bf16 %v678_v39, %v677_v38  ;;  %v2363_v42 = vpop.f32.mrb[32].mxu0 }
 0x136   :  { %v531_v43 = vadd.f32 %v2363_v42, %v2900_v50  ;;  %v522_v44 = vpop.f32.mrb[33].mxu0 }
 0x137   :  { %v523_v45 = vadd.f32 %v2900_v50, %v522_v44  ;;  %v2364_v46 = vpop.f32.mrb[34].mxu0  ;;  %2437 = vmatprep.mubr.bf16.mxu1 %v727_v41 }
 0x138   :  { %v534_v47 = vadd.f32 %v2364_v46, %v2900_v50  ;;  %v525_v48 = vpop.f32.mrb[35].mxu0  ;;  %2438 = vmatmul.mubr.bf16.gmra.mrb[28].mxu1 %v728_v40  ;;  %v683_v51 = vmax.f32 %v531_v43, 0.0 }
 0x139   :  { %v526_v49 = vadd.f32 %v2900_v50, %v525_v48  ;;  %v681_v53 = vmax.f32 %v523_v45, 0.0 }
 0x13a   :  { %v684_v52 = vmax.f32 %v534_v47, 0.0 }
 0x13b   :  { %v682_v54 = vmax.f32 %v526_v49, 0.0 }
 0x13c   :  { %v730_v55 = vpack.c.bf16 %v684_v52, %v683_v51 }
 0x13d   :  { %v729_v56 = vpack.c.bf16 %v682_v54, %v681_v53  ;;  %v2367_v57 = vpop.f32.mrb[36].mxu0 }
 0x13e   :  { %v547_v58 = vadd.f32 %v2367_v57, %v2900_v50  ;;  %v538_v59 = vpop.f32.mrb[37].mxu0 }
 0x13f   :  { %v539_v60 = vadd.f32 %v2900_v50, %v538_v59  ;;  %v2368_v61 = vpop.f32.mrb[38].mxu0  ;;  %2441 = vmatprep.mubr.bf16.mxu1 %v729_v56 }
 0x140   :  { %v550_v62 = vadd.f32 %v2368_v61, %v2900_v50  ;;  %v541_v63 = vpop.f32.mrb[39].mxu0  ;;  %2442 = vmatmul.mubr.bf16.gmra.mrb[32].mxu1 %v730_v55  ;;  %v687_v1 = vmax.f32 %v547_v58, 0.0 }
 0x141   :  { %v542_v0 = vadd.f32 %v2900_v50, %v541_v63  ;;  %v685_v3 = vmax.f32 %v539_v60, 0.0 }
 0x142   :  { %v688_v2 = vmax.f32 %v550_v62, 0.0 }
 0x143   :  { %v686_v4 = vmax.f32 %v542_v0, 0.0 }
 0x144   :  { %v732_v5 = vpack.c.bf16 %v688_v2, %v687_v1 }
 0x145   :  { %v731_v6 = vpack.c.bf16 %v686_v4, %v685_v3  ;;  %v2371_v7 = vpop.f32.mrb[40].mxu0 }
 0x146   :  { %v563_v8 = vadd.f32 %v2371_v7, %v2900_v50  ;;  %v554_v9 = vpop.f32.mrb[41].mxu0 }
 0x147   :  { %v555_v10 = vadd.f32 %v2900_v50, %v554_v9  ;;  %v2372_v11 = vpop.f32.mrb[42].mxu0  ;;  %2445 = vmatprep.mubr.bf16.mxu1 %v731_v6 }
 0x148   :  { %v566_v12 = vadd.f32 %v2372_v11, %v2900_v50  ;;  %v557_v13 = vpop.f32.mrb[43].mxu0  ;;  %2446 = vmatmul.mubr.bf16.gmra.mrb[36].mxu1 %v732_v5  ;;  %v691_v15 = vmax.f32 %v563_v8, 0.0 }
 0x149   :  { %v558_v14 = vadd.f32 %v2900_v50, %v557_v13  ;;  %v689_v17 = vmax.f32 %v555_v10, 0.0 }
 0x14a   :  { %v692_v16 = vmax.f32 %v566_v12, 0.0 }
 0x14b   :  { %v690_v18 = vmax.f32 %v558_v14, 0.0 }
 0x14c   :  { %v734_v19 = vpack.c.bf16 %v692_v16, %v691_v15 }
 0x14d   :  { %v733_v20 = vpack.c.bf16 %v690_v18, %v689_v17  ;;  %v2375_v21 = vpop.f32.mrb[44].mxu0 }
 0x14e   :  { %v579_v22 = vadd.f32 %v2375_v21, %v2900_v50  ;;  %v570_v23 = vpop.f32.mrb[45].mxu0 }
 0x14f   :  { %v571_v24 = vadd.f32 %v2900_v50, %v570_v23  ;;  %v2376_v25 = vpop.f32.mrb[46].mxu0  ;;  %2449 = vmatprep.mubr.bf16.mxu1 %v733_v20 }
 0x150   :  { %v582_v26 = vadd.f32 %v2376_v25, %v2900_v50  ;;  %v573_v27 = vpop.f32.mrb[47].mxu0  ;;  %2450 = vmatmul.mubr.bf16.gmra.mrb[40].mxu1 %v734_v19  ;;  %v695_v29 = vmax.f32 %v579_v22, 0.0 }
 0x151   :  { %v574_v28 = vadd.f32 %v2900_v50, %v573_v27  ;;  %v693_v31 = vmax.f32 %v571_v24, 0.0 }
 0x152   :  { %v696_v30 = vmax.f32 %v582_v26, 0.0 }
 0x153   :  { %v694_v32 = vmax.f32 %v574_v28, 0.0  ;;  %v2689_v28 = vld [vmem:[%s3412_s7] sm:$0xff]  }
 0x154   :  { %v736_v33 = vpack.c.bf16 %v696_v30, %v695_v29  ;;  %2553 = vmatprep.subr.bf16.mxu1 %v2689_v28  ;;  %v2690_v29 = vld [vmem:[%s3412_s7 + $0x8] sm:$0xff]  }
 0x155   :  { %v735_v34 = vpack.c.bf16 %v694_v32, %v693_v31  ;;  %v2379_v35 = vpop.f32.mrb[48].mxu0  ;;  %2554 = vmatpush3.bf16.msra.mxu1 %v2689_v28 }
 0x156   :  { %v595_v36 = vadd.f32 %v2379_v35, %v2900_v50  ;;  %v586_v37 = vpop.f32.mrb[49].mxu0  ;;  %2555 = vmatprep.subr.bf16.mxu1 %v2690_v29 }
 0x157   :  { %v587_v38 = vadd.f32 %v2900_v50, %v586_v37  ;;  %v2380_v39 = vpop.f32.mrb[50].mxu0  ;;  %2453 = vmatprep.mubr.bf16.mxu1 %v735_v34  ;;  %v2691_v37 = vld [vmem:[%s3412_s7 + $0x10] sm:$0xff]  }
 0x158   :  { %v598_v40 = vadd.f32 %v2380_v39, %v2900_v50  ;;  %v589_v41 = vpop.f32.mrb[51].mxu0  ;;  %2454 = vmatmul.mubr.bf16.gmra.mrb[44].mxu1 %v736_v33  ;;  %v699_v43 = vmax.f32 %v595_v36, 0.0 }
 0x159   :  { %v590_v42 = vadd.f32 %v2900_v50, %v589_v41  ;;  %v697_v45 = vmax.f32 %v587_v38, 0.0  ;;  %2556 = vmatpush3.bf16.msra.mxu1 %v2690_v29  ;;  %v2692_v38 = vld [vmem:[%s3412_s7 + $0x18] sm:$0xff]  }
 0x15a   :  { %v700_v44 = vmax.f32 %v598_v40, 0.0  ;;  %2557 = vmatprep.subr.bf16.mxu1 %v2691_v37 }
 0x15b   :  { %v698_v46 = vmax.f32 %v590_v42, 0.0 }
 0x15c   :  { %v738_v47 = vpack.c.bf16 %v700_v44, %v699_v43 }
 0x15d   :  { %v737_v48 = vpack.c.bf16 %v698_v46, %v697_v45  ;;  %v2383_v49 = vpop.f32.mrb[52].mxu0  ;;  %2558 = vmatpush3.bf16.msra.mxu1 %v2691_v37  ;;  %v2693_v45 = vld [vmem:[%s3412_s7 + $0x20] sm:$0xff]  }
 0x15e   :  { %v611_v51 = vadd.f32 %v2383_v49, %v2900_v50  ;;  %v602_v52 = vpop.f32.mrb[53].mxu0  ;;  %2559 = vmatprep.subr.bf16.mxu1 %v2692_v38 }
 0x15f   :  { %v603_v53 = vadd.f32 %v2900_v50, %v602_v52  ;;  %v2384_v54 = vpop.f32.mrb[54].mxu0  ;;  %2457 = vmatprep.mubr.bf16.mxu1 %v737_v48 }
 0x160   :  { %v614_v55 = vadd.f32 %v2384_v54, %v2900_v50  ;;  %v605_v56 = vpop.f32.mrb[55].mxu0  ;;  %2458 = vmatmul.mubr.bf16.gmra.mrb[48].mxu1 %v738_v47  ;;  %v703_v58 = vmax.f32 %v611_v51, 0.0 }
 0x161   :  { %v606_v57 = vadd.f32 %v2900_v50, %v605_v56  ;;  %v701_v60 = vmax.f32 %v603_v53, 0.0  ;;  %2560 = vmatpush3.bf16.msra.mxu1 %v2692_v38 }
 0x162   :  { %v704_v59 = vmax.f32 %v614_v55, 0.0  ;;  %2561 = vmatprep.subr.bf16.mxu1 %v2693_v45  ;;  %v2694_v55 = vld [vmem:[%s3412_s7 + $0x28] sm:$0xff]  }
 0x163   :  { %v702_v61 = vmax.f32 %v606_v57, 0.0 }
 0x164   :  { %v740_v62 = vpack.c.bf16 %v704_v59, %v703_v58 }
 0x165   :  { %v739_v63 = vpack.c.bf16 %v702_v61, %v701_v60  ;;  %v2387_v0 = vpop.f32.mrb[56].mxu0  ;;  %2562 = vmatpush3.bf16.msra.mxu1 %v2693_v45 }
 0x166   :  { %v627_v1 = vadd.f32 %v2387_v0, %v2900_v50  ;;  %v618_v2 = vpop.f32.mrb[57].mxu0  ;;  %2563 = vmatprep.subr.bf16.mxu1 %v2694_v55 }
 0x167   :  { %v619_v3 = vadd.f32 %v2900_v50, %v618_v2  ;;  %v2388_v4 = vpop.f32.mrb[58].mxu0  ;;  %2461 = vmatprep.mubr.bf16.mxu1 %v739_v63 }
 0x168   :  { %v630_v5 = vadd.f32 %v2388_v4, %v2900_v50  ;;  %v621_v6 = vpop.f32.mrb[59].mxu0  ;;  %2462 = vmatmul.mubr.bf16.gmra.mrb[52].mxu1 %v740_v62  ;;  %v707_v8 = vmax.f32 %v627_v1, 0.0  ;;  %v2695_v62 = vld [vmem:[%s3412_s7 + $0x30] sm:$0xff]  }
 0x169   :  { %v622_v7 = vadd.f32 %v2900_v50, %v621_v6  ;;  %v705_v10 = vmax.f32 %v619_v3, 0.0  ;;  %2564 = vmatpush3.bf16.msra.mxu1 %v2694_v55 }
 0x16a   :  { %v708_v9 = vmax.f32 %v630_v5, 0.0  ;;  %2565 = vmatprep.subr.bf16.mxu1 %v2695_v62 }
 0x16b   :  { %v706_v11 = vmax.f32 %v622_v7, 0.0  ;;  %v2696_v7 = vld [vmem:[%s3412_s7 + $0x38] sm:$0xff]  }
 0x16c   :  { %v742_v12 = vpack.c.bf16 %v708_v9, %v707_v8 }
 0x16d   :  { %v741_v13 = vpack.c.bf16 %v706_v11, %v705_v10  ;;  %v2391_v14 = vpop.f32.mrb[60].mxu0  ;;  %2566 = vmatpush3.bf16.msra.mxu1 %v2695_v62 }
 0x16e   :  { %v643_v15 = vadd.f32 %v2391_v14, %v2900_v50  ;;  %v634_v16 = vpop.f32.mrb[61].mxu0  ;;  %2567 = vmatprep.subr.bf16.mxu1 %v2696_v7 }
 0x16f   :  { %v635_v17 = vadd.f32 %v2900_v50, %v634_v16  ;;  %v2392_v18 = vpop.f32.mrb[62].mxu0  ;;  %2465 = vmatprep.mubr.bf16.mxu1 %v741_v13 }
 0x170   :  { %v646_v19 = vadd.f32 %v2392_v18, %v2900_v50  ;;  %v637_v20 = vpop.f32.mrb[63].mxu0  ;;  %2466 = vmatmul.mubr.bf16.gmra.mrb[56].mxu1 %v742_v12  ;;  %v711_v22 = vmax.f32 %v643_v15, 0.0 }
 0x171   :  { %v638_v21 = vadd.f32 %v2900_v50, %v637_v20  ;;  %v709_v24 = vmax.f32 %v635_v17, 0.0  ;;  %v2993_v50 = vld [vmem:[%s3413_s4] ss:$0 sm:$0xff]  ;;  %2568 = vmatpush3.bf16.msra.mxu1 %v2696_v7 }
 0x172   :  { %v712_v23 = vmax.f32 %v646_v19, 0.0 }
 0x173   :  { %v710_v25 = vmax.f32 %v638_v21, 0.0 }
 0x174   :  { %v744_v26 = vpack.c.bf16 %v712_v23, %v711_v22 }
 0x175   :  { %v743_v27 = vpack.c.bf16 %v710_v25, %v709_v24 }
 0x177   :  { %2469 = vmatprep.mubr.bf16.mxu1 %v743_v27 }
 0x178   :  { %2470 = vmatmul.mubr.bf16.gmra.mrb[60].mxu1 %v744_v26 }
 0x1d3   :  { %v2411_v30 = vpop.f32.mrb[0].mxu1 }
 0x1d4   :  { %v859_v31 = vadd.f32 %v2411_v30, %v2993_v50  ;;  %v850_v32 = vpop.f32.mrb[1].mxu1 }
 0x1d5   :  { %v851_v33 = vadd.f32 %v2993_v50, %v850_v32  ;;  %v2412_v34 = vpop.f32.mrb[2].mxu1 }
 0x1d6   :  { %v862_v35 = vadd.f32 %v2412_v34, %v2993_v50  ;;  %v853_v36 = vpop.f32.mrb[3].mxu1  ;;  %v1107_v40 = vmax.f32 %v859_v31, 0.0 }
 0x1d7   :  { %v854_v39 = vadd.f32 %v2993_v50, %v853_v36  ;;  %v1105_v42 = vmax.f32 %v851_v33, 0.0 }
 0x1d8   :  { %v1108_v41 = vmax.f32 %v862_v35, 0.0 }
 0x1d9   :  { %v1106_v43 = vmax.f32 %v854_v39, 0.0 }
 0x1da   :  { %v1170_v44 = vpack.c.bf16 %v1108_v41, %v1107_v40 }
 0x1db   :  { %v1169_v46 = vpack.c.bf16 %v1106_v43, %v1105_v42  ;;  %v2415_v47 = vpop.f32.mrb[4].mxu1 }
 0x1dc   :  { %v875_v48 = vadd.f32 %v2415_v47, %v2993_v50  ;;  %v866_v49 = vpop.f32.mrb[5].mxu1 }
 0x1dd   :  { %v867_v51 = vadd.f32 %v2993_v50, %v866_v49  ;;  %v2416_v52 = vpop.f32.mrb[6].mxu1  ;;  %2489 = vmatprep.mubr.bf16.mxu0 %v1169_v46 }
 0x1de   :  { %v878_v53 = vadd.f32 %v2416_v52, %v2993_v50  ;;  %v869_v54 = vpop.f32.mrb[7].mxu1  ;;  %2490 = vmatmul.mubr.bf16.vlgmr.msra.gmra.mrb[64].mxu0 %v1170_v44  ;;  %v1111_v57 = vmax.f32 %v875_v48, 0.0 }
 0x1df   :  { %v870_v56 = vadd.f32 %v2993_v50, %v869_v54  ;;  %v1109_v59 = vmax.f32 %v867_v51, 0.0 }
 0x1e0   :  { %v1112_v58 = vmax.f32 %v878_v53, 0.0 }
 0x1e1   :  { %v1110_v60 = vmax.f32 %v870_v56, 0.0 }
 0x1e2   :  { %v1172_v61 = vpack.c.bf16 %v1112_v58, %v1111_v57 }
 0x1e3   :  { %v1171_v63 = vpack.c.bf16 %v1110_v60, %v1109_v59  ;;  %v2419_v0 = vpop.f32.mrb[8].mxu1 }
 0x1e4   :  { %v891_v1 = vadd.f32 %v2419_v0, %v2993_v50  ;;  %v882_v2 = vpop.f32.mrb[9].mxu1 }
 0x1e5   :  { %v883_v3 = vadd.f32 %v2993_v50, %v882_v2  ;;  %v2420_v4 = vpop.f32.mrb[10].mxu1  ;;  %2493 = vmatprep.mubr.bf16.mxu0 %v1171_v63 }
 0x1e6   :  { %v894_v5 = vadd.f32 %v2420_v4, %v2993_v50  ;;  %v885_v6 = vpop.f32.mrb[11].mxu1  ;;  %2494 = vmatmul.mubr.bf16.gmra.mrb[68].mxu0 %v1172_v61  ;;  %v1115_v9 = vmax.f32 %v891_v1, 0.0 }
 0x1e7   :  { %v886_v8 = vadd.f32 %v2993_v50, %v885_v6  ;;  %v1113_v11 = vmax.f32 %v883_v3, 0.0 }
 0x1e8   :  { %v1116_v10 = vmax.f32 %v894_v5, 0.0 }
 0x1e9   :  { %v1114_v12 = vmax.f32 %v886_v8, 0.0 }
 0x1ea   :  { %v1174_v13 = vpack.c.bf16 %v1116_v10, %v1115_v9 }
 0x1eb   :  { %v1173_v14 = vpack.c.bf16 %v1114_v12, %v1113_v11  ;;  %v2423_v15 = vpop.f32.mrb[12].mxu1 }
 0x1ec   :  { %v907_v16 = vadd.f32 %v2423_v15, %v2993_v50  ;;  %v898_v17 = vpop.f32.mrb[13].mxu1 }
 0x1ed   :  { %v899_v18 = vadd.f32 %v2993_v50, %v898_v17  ;;  %v2424_v19 = vpop.f32.mrb[14].mxu1  ;;  %2497 = vmatprep.mubr.bf16.mxu0 %v1173_v14 }
 0x1ee   :  { %v910_v20 = vadd.f32 %v2424_v19, %v2993_v50  ;;  %v901_v21 = vpop.f32.mrb[15].mxu1  ;;  %2498 = vmatmul.mubr.bf16.gmra.mrb[72].mxu0 %v1174_v13  ;;  %v1119_v23 = vmax.f32 %v907_v16, 0.0 }
 0x1ef   :  { %v902_v22 = vadd.f32 %v2993_v50, %v901_v21  ;;  %v1117_v25 = vmax.f32 %v899_v18, 0.0 }
 0x1f0   :  { %v1120_v24 = vmax.f32 %v910_v20, 0.0 }
 0x1f1   :  { %v1118_v26 = vmax.f32 %v902_v22, 0.0 }
 0x1f2   :  { %v1176_v27 = vpack.c.bf16 %v1120_v24, %v1119_v23 }
 0x1f3   :  { %v1175_v28 = vpack.c.bf16 %v1118_v26, %v1117_v25  ;;  %v2427_v29 = vpop.f32.mrb[16].mxu1 }
 0x1f4   :  { %v923_v30 = vadd.f32 %v2427_v29, %v2993_v50  ;;  %v914_v31 = vpop.f32.mrb[17].mxu1 }
 0x1f5   :  { %v915_v32 = vadd.f32 %v2993_v50, %v914_v31  ;;  %v2428_v33 = vpop.f32.mrb[18].mxu1  ;;  %2501 = vmatprep.mubr.bf16.mxu0 %v1175_v28 }
 0x1f6   :  { %v926_v34 = vadd.f32 %v2428_v33, %v2993_v50  ;;  %v917_v35 = vpop.f32.mrb[19].mxu1  ;;  %2502 = vmatmul.mubr.bf16.gmra.mrb[76].mxu0 %v1176_v27  ;;  %v1123_v37 = vmax.f32 %v923_v30, 0.0 }
 0x1f7   :  { %v918_v36 = vadd.f32 %v2993_v50, %v917_v35  ;;  %v1121_v39 = vmax.f32 %v915_v32, 0.0 }
 0x1f8   :  { %v1124_v38 = vmax.f32 %v926_v34, 0.0 }
 0x1f9   :  { %v1122_v40 = vmax.f32 %v918_v36, 0.0 }
 0x1fa   :  { %v1178_v41 = vpack.c.bf16 %v1124_v38, %v1123_v37 }
 0x1fb   :  { %v1177_v42 = vpack.c.bf16 %v1122_v40, %v1121_v39  ;;  %v2431_v43 = vpop.f32.mrb[20].mxu1 }
 0x1fc   :  { %v939_v44 = vadd.f32 %v2431_v43, %v2993_v50  ;;  %v930_v45 = vpop.f32.mrb[21].mxu1 }
 0x1fd   :  { %v931_v46 = vadd.f32 %v2993_v50, %v930_v45  ;;  %v2432_v47 = vpop.f32.mrb[22].mxu1  ;;  %2505 = vmatprep.mubr.bf16.mxu0 %v1177_v42 }
 0x1fe   :  { %v942_v48 = vadd.f32 %v2432_v47, %v2993_v50  ;;  %v933_v49 = vpop.f32.mrb[23].mxu1  ;;  %2506 = vmatmul.mubr.bf16.gmra.mrb[80].mxu0 %v1178_v41  ;;  %v1127_v52 = vmax.f32 %v939_v44, 0.0 }
 0x1ff   :  { %v934_v51 = vadd.f32 %v2993_v50, %v933_v49  ;;  %v1125_v54 = vmax.f32 %v931_v46, 0.0 }
 0x200   :  { %v1128_v53 = vmax.f32 %v942_v48, 0.0 }
 0x201   :  { %v1126_v55 = vmax.f32 %v934_v51, 0.0 }
 0x202   :  { %v1180_v56 = vpack.c.bf16 %v1128_v53, %v1127_v52 }
 0x203   :  { %v1179_v57 = vpack.c.bf16 %v1126_v55, %v1125_v54  ;;  %v2435_v58 = vpop.f32.mrb[24].mxu1 }
 0x204   :  { %v955_v59 = vadd.f32 %v2435_v58, %v2993_v50  ;;  %v946_v60 = vpop.f32.mrb[25].mxu1 }
 0x205   :  { %v947_v61 = vadd.f32 %v2993_v50, %v946_v60  ;;  %v2436_v62 = vpop.f32.mrb[26].mxu1  ;;  %2509 = vmatprep.mubr.bf16.mxu0 %v1179_v57 }
 0x206   :  { %v958_v63 = vadd.f32 %v2436_v62, %v2993_v50  ;;  %v949_v0 = vpop.f32.mrb[27].mxu1  ;;  %2510 = vmatmul.mubr.bf16.gmra.mrb[84].mxu0 %v1180_v56  ;;  %v1131_v2 = vmax.f32 %v955_v59, 0.0 }
 0x207   :  { %v950_v1 = vadd.f32 %v2993_v50, %v949_v0  ;;  %v1129_v4 = vmax.f32 %v947_v61, 0.0 }
 0x208   :  { %v1132_v3 = vmax.f32 %v958_v63, 0.0 }
 0x209   :  { %v1130_v5 = vmax.f32 %v950_v1, 0.0 }
 0x20a   :  { %v1182_v6 = vpack.c.bf16 %v1132_v3, %v1131_v2 }
 0x20b   :  { %v1181_v7 = vpack.c.bf16 %v1130_v5, %v1129_v4  ;;  %v2439_v8 = vpop.f32.mrb[28].mxu1 }
 0x20c   :  { %v971_v9 = vadd.f32 %v2439_v8, %v2993_v50  ;;  %v962_v10 = vpop.f32.mrb[29].mxu1 }
 0x20d   :  { %v963_v11 = vadd.f32 %v2993_v50, %v962_v10  ;;  %v2440_v12 = vpop.f32.mrb[30].mxu1  ;;  %2513 = vmatprep.mubr.bf16.mxu0 %v1181_v7 }
 0x20e   :  { %v974_v13 = vadd.f32 %v2440_v12, %v2993_v50  ;;  %v965_v14 = vpop.f32.mrb[31].mxu1  ;;  %2514 = vmatmul.mubr.bf16.gmra.mrb[88].mxu0 %v1182_v6  ;;  %v1135_v16 = vmax.f32 %v971_v9, 0.0 }
 0x20f   :  { %v966_v15 = vadd.f32 %v2993_v50, %v965_v14  ;;  %v1133_v18 = vmax.f32 %v963_v11, 0.0 }
 0x210   :  { %v1136_v17 = vmax.f32 %v974_v13, 0.0 }
 0x211   :  { %v1134_v19 = vmax.f32 %v966_v15, 0.0 }
 0x212   :  { %v1184_v20 = vpack.c.bf16 %v1136_v17, %v1135_v16 }
 0x213   :  { %v1183_v21 = vpack.c.bf16 %v1134_v19, %v1133_v18  ;;  %v2443_v22 = vpop.f32.mrb[32].mxu1 }
 0x214   :  { %v987_v23 = vadd.f32 %v2443_v22, %v2993_v50  ;;  %v978_v24 = vpop.f32.mrb[33].mxu1 }
 0x215   :  { %v979_v25 = vadd.f32 %v2993_v50, %v978_v24  ;;  %v2444_v26 = vpop.f32.mrb[34].mxu1  ;;  %2517 = vmatprep.mubr.bf16.mxu0 %v1183_v21 }
 0x216   :  { %v990_v27 = vadd.f32 %v2444_v26, %v2993_v50  ;;  %v981_v28 = vpop.f32.mrb[35].mxu1  ;;  %2518 = vmatmul.mubr.bf16.gmra.mrb[92].mxu0 %v1184_v20  ;;  %v1139_v30 = vmax.f32 %v987_v23, 0.0 }
 0x217   :  { %v982_v29 = vadd.f32 %v2993_v50, %v981_v28  ;;  %v1137_v32 = vmax.f32 %v979_v25, 0.0 }
 0x218   :  { %v1140_v31 = vmax.f32 %v990_v27, 0.0 }
 0x219   :  { %v1138_v33 = vmax.f32 %v982_v29, 0.0 }
 0x21a   :  { %v1186_v34 = vpack.c.bf16 %v1140_v31, %v1139_v30 }
 0x21b   :  { %v1185_v35 = vpack.c.bf16 %v1138_v33, %v1137_v32  ;;  %v2447_v36 = vpop.f32.mrb[36].mxu1 }
 0x21c   :  { %v1003_v37 = vadd.f32 %v2447_v36, %v2993_v50  ;;  %v994_v38 = vpop.f32.mrb[37].mxu1 }
 0x21d   :  { %v995_v39 = vadd.f32 %v2993_v50, %v994_v38  ;;  %v2448_v40 = vpop.f32.mrb[38].mxu1  ;;  %2521 = vmatprep.mubr.bf16.mxu0 %v1185_v35 }
 0x21e   :  { %v1006_v41 = vadd.f32 %v2448_v40, %v2993_v50  ;;  %v997_v42 = vpop.f32.mrb[39].mxu1  ;;  %2522 = vmatmul.mubr.bf16.gmra.mrb[96].mxu0 %v1186_v34  ;;  %v1143_v44 = vmax.f32 %v1003_v37, 0.0 }
 0x21f   :  { %v998_v43 = vadd.f32 %v2993_v50, %v997_v42  ;;  %v1141_v46 = vmax.f32 %v995_v39, 0.0 }
 0x220   :  { %v1144_v45 = vmax.f32 %v1006_v41, 0.0 }
 0x221   :  { %v1142_v47 = vmax.f32 %v998_v43, 0.0 }
 0x222   :  { %v1188_v48 = vpack.c.bf16 %v1144_v45, %v1143_v44 }
 0x223   :  { %v1187_v49 = vpack.c.bf16 %v1142_v47, %v1141_v46  ;;  %v2451_v51 = vpop.f32.mrb[40].mxu1 }
 0x224   :  { %v1019_v52 = vadd.f32 %v2451_v51, %v2993_v50  ;;  %v1010_v53 = vpop.f32.mrb[41].mxu1 }
 0x225   :  { %v1011_v54 = vadd.f32 %v2993_v50, %v1010_v53  ;;  %v2452_v55 = vpop.f32.mrb[42].mxu1  ;;  %2525 = vmatprep.mubr.bf16.mxu0 %v1187_v49 }
 0x226   :  { %v1022_v56 = vadd.f32 %v2452_v55, %v2993_v50  ;;  %v1013_v57 = vpop.f32.mrb[43].mxu1  ;;  %2526 = vmatmul.mubr.bf16.gmra.mrb[100].mxu0 %v1188_v48  ;;  %v1147_v59 = vmax.f32 %v1019_v52, 0.0 }
 0x227   :  { %v1014_v58 = vadd.f32 %v2993_v50, %v1013_v57  ;;  %v1145_v61 = vmax.f32 %v1011_v54, 0.0 }
 0x228   :  { %v1148_v60 = vmax.f32 %v1022_v56, 0.0 }
 0x229   :  { %v1146_v62 = vmax.f32 %v1014_v58, 0.0 }
 0x22a   :  { %v1190_v63 = vpack.c.bf16 %v1148_v60, %v1147_v59 }
 0x22b   :  { %v1189_v0 = vpack.c.bf16 %v1146_v62, %v1145_v61  ;;  %v2455_v1 = vpop.f32.mrb[44].mxu1 }
 0x22c   :  { %v1035_v2 = vadd.f32 %v2455_v1, %v2993_v50  ;;  %v1026_v3 = vpop.f32.mrb[45].mxu1 }
 0x22d   :  { %v1027_v4 = vadd.f32 %v2993_v50, %v1026_v3  ;;  %v2456_v5 = vpop.f32.mrb[46].mxu1  ;;  %2529 = vmatprep.mubr.bf16.mxu0 %v1189_v0 }
 0x22e   :  { %v1038_v6 = vadd.f32 %v2456_v5, %v2993_v50  ;;  %v1029_v7 = vpop.f32.mrb[47].mxu1  ;;  %2530 = vmatmul.mubr.bf16.gmra.mrb[104].mxu0 %v1190_v63  ;;  %v1151_v9 = vmax.f32 %v1035_v2, 0.0 }
 0x22f   :  { %v1030_v8 = vadd.f32 %v2993_v50, %v1029_v7  ;;  %v1149_v11 = vmax.f32 %v1027_v4, 0.0 }
 0x230   :  { %v1152_v10 = vmax.f32 %v1038_v6, 0.0 }
 0x231   :  { %v1150_v12 = vmax.f32 %v1030_v8, 0.0  ;;  %v3080_v8 = vld [vmem:[%s3414_s6] ss:$0 sm:$0xff] }
 0x232   :  { %v1192_v13 = vpack.c.bf16 %v1152_v10, %v1151_v9 }
 0x233   :  { %v1191_v14 = vpack.c.bf16 %v1150_v12, %v1149_v11  ;;  %v2459_v15 = vpop.f32.mrb[48].mxu1 }
 0x234   :  { %v1051_v16 = vadd.f32 %v2459_v15, %v2993_v50  ;;  %v1042_v17 = vpop.f32.mrb[49].mxu1 }
 0x235   :  { %v1043_v18 = vadd.f32 %v2993_v50, %v1042_v17  ;;  %v2460_v19 = vpop.f32.mrb[50].mxu1  ;;  %2533 = vmatprep.mubr.bf16.mxu0 %v1191_v14 }
 0x236   :  { %v1054_v20 = vadd.f32 %v2460_v19, %v2993_v50  ;;  %v1045_v21 = vpop.f32.mrb[51].mxu1  ;;  %2534 = vmatmul.mubr.bf16.gmra.mrb[108].mxu0 %v1192_v13  ;;  %v1155_v23 = vmax.f32 %v1051_v16, 0.0 }
 0x237   :  { %v1046_v22 = vadd.f32 %v2993_v50, %v1045_v21  ;;  %v1153_v25 = vmax.f32 %v1043_v18, 0.0 }
 0x238   :  { %v1156_v24 = vmax.f32 %v1054_v20, 0.0 }
 0x239   :  { %v1154_v26 = vmax.f32 %v1046_v22, 0.0 }
 0x23a   :  { %v1194_v27 = vpack.c.bf16 %v1156_v24, %v1155_v23 }
 0x23b   :  { %v1193_v28 = vpack.c.bf16 %v1154_v26, %v1153_v25  ;;  %v2463_v29 = vpop.f32.mrb[52].mxu1 }
 0x23c   :  { %v1067_v30 = vadd.f32 %v2463_v29, %v2993_v50  ;;  %v1058_v31 = vpop.f32.mrb[53].mxu1 }
 0x23d   :  { %v1059_v32 = vadd.f32 %v2993_v50, %v1058_v31  ;;  %v2464_v33 = vpop.f32.mrb[54].mxu1  ;;  %2537 = vmatprep.mubr.bf16.mxu0 %v1193_v28 }
 0x23e   :  { %v1070_v34 = vadd.f32 %v2464_v33, %v2993_v50  ;;  %v1061_v35 = vpop.f32.mrb[55].mxu1  ;;  %2538 = vmatmul.mubr.bf16.gmra.mrb[112].mxu0 %v1194_v27  ;;  %v1159_v37 = vmax.f32 %v1067_v30, 0.0 }
 0x23f   :  { %v1062_v36 = vadd.f32 %v2993_v50, %v1061_v35  ;;  %v1157_v39 = vmax.f32 %v1059_v32, 0.0 }
 0x240   :  { %v1160_v38 = vmax.f32 %v1070_v34, 0.0 }
 0x241   :  { %v1158_v40 = vmax.f32 %v1062_v36, 0.0 }
 0x242   :  { %v1196_v41 = vpack.c.bf16 %v1160_v38, %v1159_v37 }
 0x243   :  { %v1195_v42 = vpack.c.bf16 %v1158_v40, %v1157_v39  ;;  %v2467_v43 = vpop.f32.mrb[56].mxu1 }
 0x244   :  { %v1083_v44 = vadd.f32 %v2467_v43, %v2993_v50  ;;  %v1074_v45 = vpop.f32.mrb[57].mxu1 }
 0x245   :  { %v1075_v46 = vadd.f32 %v2993_v50, %v1074_v45  ;;  %v2468_v47 = vpop.f32.mrb[58].mxu1  ;;  %2541 = vmatprep.mubr.bf16.mxu0 %v1195_v42 }
 0x246   :  { %v1086_v48 = vadd.f32 %v2468_v47, %v2993_v50  ;;  %v1077_v49 = vpop.f32.mrb[59].mxu1  ;;  %2542 = vmatmul.mubr.bf16.gmra.mrb[116].mxu0 %v1196_v41  ;;  %v1163_v52 = vmax.f32 %v1083_v44, 0.0 }
 0x247   :  { %v1078_v51 = vadd.f32 %v2993_v50, %v1077_v49  ;;  %v1161_v54 = vmax.f32 %v1075_v46, 0.0 }
 0x248   :  { %v1164_v53 = vmax.f32 %v1086_v48, 0.0 }
 0x249   :  { %v1162_v55 = vmax.f32 %v1078_v51, 0.0 }
 0x24a   :  { %v1198_v56 = vpack.c.bf16 %v1164_v53, %v1163_v52 }
 0x24b   :  { %v1197_v57 = vpack.c.bf16 %v1162_v55, %v1161_v54  ;;  %v2471_v58 = vpop.f32.mrb[60].mxu1 }
 0x24c   :  { %v1099_v59 = vadd.f32 %v2471_v58, %v2993_v50  ;;  %v1090_v60 = vpop.f32.mrb[61].mxu1 }
 0x24d   :  { %v1091_v61 = vadd.f32 %v2993_v50, %v1090_v60  ;;  %v2472_v62 = vpop.f32.mrb[62].mxu1  ;;  %2545 = vmatprep.mubr.bf16.mxu0 %v1197_v57 }
 0x24e   :  { %v1102_v63 = vadd.f32 %v2472_v62, %v2993_v50  ;;  %v1093_v0 = vpop.f32.mrb[63].mxu1  ;;  %2546 = vmatmul.mubr.bf16.gmra.mrb[120].mxu0 %v1198_v56  ;;  %v1167_v2 = vmax.f32 %v1099_v59, 0.0 }
 0x24f   :  { %v1094_v1 = vadd.f32 %v2993_v50, %v1093_v0  ;;  %v1165_v4 = vmax.f32 %v1091_v61, 0.0 }
 0x250   :  { %v1168_v3 = vmax.f32 %v1102_v63, 0.0 }
 0x251   :  { %v1166_v5 = vmax.f32 %v1094_v1, 0.0 }
 0x252   :  { %v1200_v6 = vpack.c.bf16 %v1168_v3, %v1167_v2 }
 0x253   :  { %v1199_v7 = vpack.c.bf16 %v1166_v5, %v1165_v4 }
 0x255   :  { %2549 = vmatprep.mubr.bf16.mxu0 %v1199_v7 }
 0x256   :  { %2550 = vmatmul.mubr.bf16.gmra.mrb[124].mxu0 %v1200_v6 }
 0x2b1   :  { %v2491_v9 = vpop.f32.mrb[64].mxu0 }
 0x2b2   :  { %v1315_v10 = vadd.f32 %v2491_v9, %v3080_v8  ;;  %v1306_v11 = vpop.f32.mrb[65].mxu0 }
 0x2b3   :  { %v1307_v12 = vadd.f32 %v3080_v8, %v1306_v11  ;;  %v2492_v50 = vpop.f32.mrb[66].mxu0 }
 0x2b4   :  { %v1318_v13 = vadd.f32 %v2492_v50, %v3080_v8  ;;  %v1309_v14 = vpop.f32.mrb[67].mxu0  ;;  %v1563_v16 = vmax.f32 %v1315_v10, 0.0 }
 0x2b5   :  { %v1310_v15 = vadd.f32 %v3080_v8, %v1309_v14  ;;  %v1561_v18 = vmax.f32 %v1307_v12, 0.0 }
 0x2b6   :  { %v1564_v17 = vmax.f32 %v1318_v13, 0.0 }
 0x2b7   :  { %v1562_v19 = vmax.f32 %v1310_v15, 0.0 }
 0x2b8   :  { %v1626_v20 = vpack.c.bf16 %v1564_v17, %v1563_v16 }
 0x2b9   :  { %v1625_v21 = vpack.c.bf16 %v1562_v19, %v1561_v18  ;;  %v2495_v22 = vpop.f32.mrb[68].mxu0 }
 0x2ba   :  { %v1331_v23 = vadd.f32 %v2495_v22, %v3080_v8  ;;  %v1322_v24 = vpop.f32.mrb[69].mxu0 }
 0x2bb   :  { %v1323_v25 = vadd.f32 %v3080_v8, %v1322_v24  ;;  %v2496_v26 = vpop.f32.mrb[70].mxu0  ;;  %2569 = vmatprep.mubr.bf16.mxu1 %v1625_v21 }
 0x2bc   :  { %v1334_v27 = vadd.f32 %v2496_v26, %v3080_v8  ;;  %v1325_v28 = vpop.f32.mrb[71].mxu0  ;;  %2570 = vmatmul.mubr.bf16.vlgmr.msra.gmra.mrb[64].mxu1 %v1626_v20  ;;  %v1567_v30 = vmax.f32 %v1331_v23, 0.0 }
 0x2bd   :  { %v1326_v29 = vadd.f32 %v3080_v8, %v1325_v28  ;;  %v1565_v32 = vmax.f32 %v1323_v25, 0.0 }
 0x2be   :  { %v1568_v31 = vmax.f32 %v1334_v27, 0.0 }
 0x2bf   :  { %v1566_v33 = vmax.f32 %v1326_v29, 0.0 }
 0x2c0   :  { %v1628_v34 = vpack.c.bf16 %v1568_v31, %v1567_v30 }
 0x2c1   :  { %v1627_v35 = vpack.c.bf16 %v1566_v33, %v1565_v32  ;;  %v2499_v36 = vpop.f32.mrb[72].mxu0 }
 0x2c2   :  { %v1347_v37 = vadd.f32 %v2499_v36, %v3080_v8  ;;  %v1338_v38 = vpop.f32.mrb[73].mxu0 }
 0x2c3   :  { %v1339_v39 = vadd.f32 %v3080_v8, %v1338_v38  ;;  %v2500_v40 = vpop.f32.mrb[74].mxu0  ;;  %2573 = vmatprep.mubr.bf16.mxu1 %v1627_v35 }
 0x2c4   :  { %v1350_v41 = vadd.f32 %v2500_v40, %v3080_v8  ;;  %v1341_v42 = vpop.f32.mrb[75].mxu0  ;;  %2574 = vmatmul.mubr.bf16.gmra.mrb[68].mxu1 %v1628_v34  ;;  %v1571_v44 = vmax.f32 %v1347_v37, 0.0 }
 0x2c5   :  { %v1342_v43 = vadd.f32 %v3080_v8, %v1341_v42  ;;  %v1569_v46 = vmax.f32 %v1339_v39, 0.0 }
 0x2c6   :  { %v1572_v45 = vmax.f32 %v1350_v41, 0.0 }
 0x2c7   :  { %v1570_v47 = vmax.f32 %v1342_v43, 0.0 }
 0x2c8   :  { %v1630_v48 = vpack.c.bf16 %v1572_v45, %v1571_v44 }
 0x2c9   :  { %v1629_v49 = vpack.c.bf16 %v1570_v47, %v1569_v46  ;;  %v2503_v51 = vpop.f32.mrb[76].mxu0 }
 0x2ca   :  { %v1363_v52 = vadd.f32 %v2503_v51, %v3080_v8  ;;  %v1354_v53 = vpop.f32.mrb[77].mxu0 }
 0x2cb   :  { %v1355_v54 = vadd.f32 %v3080_v8, %v1354_v53  ;;  %v2504_v55 = vpop.f32.mrb[78].mxu0  ;;  %2577 = vmatprep.mubr.bf16.mxu1 %v1629_v49 }
 0x2cc   :  { %v1366_v56 = vadd.f32 %v2504_v55, %v3080_v8  ;;  %v1357_v57 = vpop.f32.mrb[79].mxu0  ;;  %2578 = vmatmul.mubr.bf16.gmra.mrb[72].mxu1 %v1630_v48  ;;  %v1575_v59 = vmax.f32 %v1363_v52, 0.0 }
 0x2cd   :  { %v1358_v58 = vadd.f32 %v3080_v8, %v1357_v57  ;;  %v1573_v61 = vmax.f32 %v1355_v54, 0.0 }
 0x2ce   :  { %v1576_v60 = vmax.f32 %v1366_v56, 0.0 }
 0x2cf   :  { %v1574_v62 = vmax.f32 %v1358_v58, 0.0 }
 0x2d0   :  { %v1632_v63 = vpack.c.bf16 %v1576_v60, %v1575_v59 }
 0x2d1   :  { %v1631_v0 = vpack.c.bf16 %v1574_v62, %v1573_v61  ;;  %v2507_v1 = vpop.f32.mrb[80].mxu0 }
 0x2d2   :  { %v1379_v2 = vadd.f32 %v2507_v1, %v3080_v8  ;;  %v1370_v3 = vpop.f32.mrb[81].mxu0 }
 0x2d3   :  { %v1371_v4 = vadd.f32 %v3080_v8, %v1370_v3  ;;  %v2508_v5 = vpop.f32.mrb[82].mxu0  ;;  %2581 = vmatprep.mubr.bf16.mxu1 %v1631_v0 }
 0x2d4   :  { %v1382_v6 = vadd.f32 %v2508_v5, %v3080_v8  ;;  %v1373_v7 = vpop.f32.mrb[83].mxu0  ;;  %2582 = vmatmul.mubr.bf16.gmra.mrb[76].mxu1 %v1632_v63  ;;  %v1579_v10 = vmax.f32 %v1379_v2, 0.0 }
 0x2d5   :  { %v1374_v9 = vadd.f32 %v3080_v8, %v1373_v7  ;;  %v1577_v12 = vmax.f32 %v1371_v4, 0.0 }
 0x2d6   :  { %v1580_v11 = vmax.f32 %v1382_v6, 0.0 }
 0x2d7   :  { %v1578_v50 = vmax.f32 %v1374_v9, 0.0 }
 0x2d8   :  { %v1634_v13 = vpack.c.bf16 %v1580_v11, %v1579_v10 }
 0x2d9   :  { %v1633_v14 = vpack.c.bf16 %v1578_v50, %v1577_v12  ;;  %v2511_v15 = vpop.f32.mrb[84].mxu0 }
 0x2da   :  { %v1395_v16 = vadd.f32 %v2511_v15, %v3080_v8  ;;  %v1386_v17 = vpop.f32.mrb[85].mxu0 }
 0x2db   :  { %v1387_v18 = vadd.f32 %v3080_v8, %v1386_v17  ;;  %v2512_v19 = vpop.f32.mrb[86].mxu0  ;;  %2585 = vmatprep.mubr.bf16.mxu1 %v1633_v14 }
 0x2dc   :  { %v1398_v20 = vadd.f32 %v2512_v19, %v3080_v8  ;;  %v1389_v21 = vpop.f32.mrb[87].mxu0  ;;  %2586 = vmatmul.mubr.bf16.gmra.mrb[80].mxu1 %v1634_v13  ;;  %v1583_v23 = vmax.f32 %v1395_v16, 0.0 }
 0x2dd   :  { %v1390_v22 = vadd.f32 %v3080_v8, %v1389_v21  ;;  %v1581_v25 = vmax.f32 %v1387_v18, 0.0 }
 0x2de   :  { %v1584_v24 = vmax.f32 %v1398_v20, 0.0 }
 0x2df   :  { %v1582_v26 = vmax.f32 %v1390_v22, 0.0 }
 0x2e0   :  { %v1636_v27 = vpack.c.bf16 %v1584_v24, %v1583_v23 }
 0x2e1   :  { %v1635_v28 = vpack.c.bf16 %v1582_v26, %v1581_v25  ;;  %v2515_v29 = vpop.f32.mrb[88].mxu0 }
 0x2e2   :  { %v1411_v30 = vadd.f32 %v2515_v29, %v3080_v8  ;;  %v1402_v31 = vpop.f32.mrb[89].mxu0 }
 0x2e3   :  { %v1403_v32 = vadd.f32 %v3080_v8, %v1402_v31  ;;  %v2516_v33 = vpop.f32.mrb[90].mxu0  ;;  %2589 = vmatprep.mubr.bf16.mxu1 %v1635_v28 }
 0x2e4   :  { %v1414_v34 = vadd.f32 %v2516_v33, %v3080_v8  ;;  %v1405_v35 = vpop.f32.mrb[91].mxu0  ;;  %2590 = vmatmul.mubr.bf16.gmra.mrb[84].mxu1 %v1636_v27  ;;  %v1587_v37 = vmax.f32 %v1411_v30, 0.0 }
 0x2e5   :  { %v1406_v36 = vadd.f32 %v3080_v8, %v1405_v35  ;;  %v1585_v39 = vmax.f32 %v1403_v32, 0.0 }
 0x2e6   :  { %v1588_v38 = vmax.f32 %v1414_v34, 0.0 }
 0x2e7   :  { %v1586_v40 = vmax.f32 %v1406_v36, 0.0 }
 0x2e8   :  { %v1638_v41 = vpack.c.bf16 %v1588_v38, %v1587_v37 }
 0x2e9   :  { %v1637_v42 = vpack.c.bf16 %v1586_v40, %v1585_v39  ;;  %v2519_v43 = vpop.f32.mrb[92].mxu0 }
 0x2ea   :  { %v1427_v44 = vadd.f32 %v2519_v43, %v3080_v8  ;;  %v1418_v45 = vpop.f32.mrb[93].mxu0 }
 0x2eb   :  { %v1419_v46 = vadd.f32 %v3080_v8, %v1418_v45  ;;  %v2520_v47 = vpop.f32.mrb[94].mxu0  ;;  %2593 = vmatprep.mubr.bf16.mxu1 %v1637_v42 }
 0x2ec   :  { %v1430_v48 = vadd.f32 %v2520_v47, %v3080_v8  ;;  %v1421_v49 = vpop.f32.mrb[95].mxu0  ;;  %2594 = vmatmul.mubr.bf16.gmra.mrb[88].mxu1 %v1638_v41  ;;  %v1591_v52 = vmax.f32 %v1427_v44, 0.0 }
 0x2ed   :  { %v1422_v51 = vadd.f32 %v3080_v8, %v1421_v49  ;;  %v1589_v54 = vmax.f32 %v1419_v46, 0.0 }
 0x2ee   :  { %v1592_v53 = vmax.f32 %v1430_v48, 0.0 }
 0x2ef   :  { %v1590_v55 = vmax.f32 %v1422_v51, 0.0 }
 0x2f0   :  { %v1640_v56 = vpack.c.bf16 %v1592_v53, %v1591_v52 }
 0x2f1   :  { %v1639_v57 = vpack.c.bf16 %v1590_v55, %v1589_v54  ;;  %v2523_v58 = vpop.f32.mrb[96].mxu0 }
 0x2f2   :  { %v1443_v59 = vadd.f32 %v2523_v58, %v3080_v8  ;;  %v1434_v60 = vpop.f32.mrb[97].mxu0 }
 0x2f3   :  { %v1435_v61 = vadd.f32 %v3080_v8, %v1434_v60  ;;  %v2524_v62 = vpop.f32.mrb[98].mxu0  ;;  %2597 = vmatprep.mubr.bf16.mxu1 %v1639_v57 }
 0x2f4   :  { %v1446_v63 = vadd.f32 %v2524_v62, %v3080_v8  ;;  %v1437_v0 = vpop.f32.mrb[99].mxu0  ;;  %2598 = vmatmul.mubr.bf16.gmra.mrb[92].mxu1 %v1640_v56  ;;  %v1595_v2 = vmax.f32 %v1443_v59, 0.0 }
 0x2f5   :  { %v1438_v1 = vadd.f32 %v3080_v8, %v1437_v0  ;;  %v1593_v4 = vmax.f32 %v1435_v61, 0.0 }
 0x2f6   :  { %v1596_v3 = vmax.f32 %v1446_v63, 0.0 }
 0x2f7   :  { %v1594_v5 = vmax.f32 %v1438_v1, 0.0 }
 0x2f8   :  { %v1642_v6 = vpack.c.bf16 %v1596_v3, %v1595_v2 }
 0x2f9   :  { %v1641_v7 = vpack.c.bf16 %v1594_v5, %v1593_v4  ;;  %v2527_v9 = vpop.f32.mrb[100].mxu0 }
 0x2fa   :  { %v1459_v10 = vadd.f32 %v2527_v9, %v3080_v8  ;;  %v1450_v11 = vpop.f32.mrb[101].mxu0 }
 0x2fb   :  { %v1451_v12 = vadd.f32 %v3080_v8, %v1450_v11  ;;  %v2528_v50 = vpop.f32.mrb[102].mxu0  ;;  %2601 = vmatprep.mubr.bf16.mxu1 %v1641_v7 }
 0x2fc   :  { %v1462_v13 = vadd.f32 %v2528_v50, %v3080_v8  ;;  %v1453_v14 = vpop.f32.mrb[103].mxu0  ;;  %2602 = vmatmul.mubr.bf16.gmra.mrb[96].mxu1 %v1642_v6  ;;  %v1599_v16 = vmax.f32 %v1459_v10, 0.0 }
 0x2fd   :  { %v1454_v15 = vadd.f32 %v3080_v8, %v1453_v14  ;;  %v1597_v18 = vmax.f32 %v1451_v12, 0.0 }
 0x2fe   :  { %v1600_v17 = vmax.f32 %v1462_v13, 0.0 }
 0x2ff   :  { %v1598_v19 = vmax.f32 %v1454_v15, 0.0 }
 0x300   :  { %v1644_v20 = vpack.c.bf16 %v1600_v17, %v1599_v16 }
 0x301   :  { %v1643_v21 = vpack.c.bf16 %v1598_v19, %v1597_v18  ;;  %v2531_v22 = vpop.f32.mrb[104].mxu0 }
 0x302   :  { %v1475_v23 = vadd.f32 %v2531_v22, %v3080_v8  ;;  %v1466_v24 = vpop.f32.mrb[105].mxu0 }
 0x303   :  { %v1467_v25 = vadd.f32 %v3080_v8, %v1466_v24  ;;  %v2532_v26 = vpop.f32.mrb[106].mxu0  ;;  %2605 = vmatprep.mubr.bf16.mxu1 %v1643_v21 }
 0x304   :  { %v1478_v27 = vadd.f32 %v2532_v26, %v3080_v8  ;;  %v1469_v28 = vpop.f32.mrb[107].mxu0  ;;  %2606 = vmatmul.mubr.bf16.gmra.mrb[100].mxu1 %v1644_v20  ;;  %v1603_v30 = vmax.f32 %v1475_v23, 0.0 }
 0x305   :  { %v1470_v29 = vadd.f32 %v3080_v8, %v1469_v28  ;;  %v1601_v32 = vmax.f32 %v1467_v25, 0.0 }
 0x306   :  { %v1604_v31 = vmax.f32 %v1478_v27, 0.0 }
 0x307   :  { %v1602_v33 = vmax.f32 %v1470_v29, 0.0 }
 0x308   :  { %v1646_v34 = vpack.c.bf16 %v1604_v31, %v1603_v30 }
 0x309   :  { %v1645_v35 = vpack.c.bf16 %v1602_v33, %v1601_v32  ;;  %v2535_v36 = vpop.f32.mrb[108].mxu0 }
 0x30a   :  { %v1491_v37 = vadd.f32 %v2535_v36, %v3080_v8  ;;  %v1482_v38 = vpop.f32.mrb[109].mxu0 }
 0x30b   :  { %v1483_v39 = vadd.f32 %v3080_v8, %v1482_v38  ;;  %v2536_v40 = vpop.f32.mrb[110].mxu0  ;;  %2609 = vmatprep.mubr.bf16.mxu1 %v1645_v35 }
 0x30c   :  { %v1494_v41 = vadd.f32 %v2536_v40, %v3080_v8  ;;  %v1485_v42 = vpop.f32.mrb[111].mxu0  ;;  %2610 = vmatmul.mubr.bf16.gmra.mrb[104].mxu1 %v1646_v34  ;;  %v1607_v44 = vmax.f32 %v1491_v37, 0.0 }
 0x30d   :  { %v1486_v43 = vadd.f32 %v3080_v8, %v1485_v42  ;;  %v1605_v46 = vmax.f32 %v1483_v39, 0.0 }
 0x30e   :  { %v1608_v45 = vmax.f32 %v1494_v41, 0.0 }
 0x30f   :  { %v1606_v47 = vmax.f32 %v1486_v43, 0.0  ;;  %v3149_v43 = vld [vmem:[%s3415_s8] ss:$0 sm:$0xff] }
 0x310   :  { %v1648_v48 = vpack.c.bf16 %v1608_v45, %v1607_v44 }
 0x311   :  { %v1647_v49 = vpack.c.bf16 %v1606_v47, %v1605_v46  ;;  %v2539_v51 = vpop.f32.mrb[112].mxu0 }
 0x312   :  { %v1507_v52 = vadd.f32 %v2539_v51, %v3080_v8  ;;  %v1498_v53 = vpop.f32.mrb[113].mxu0 }
 0x313   :  { %v1499_v54 = vadd.f32 %v3080_v8, %v1498_v53  ;;  %v2540_v55 = vpop.f32.mrb[114].mxu0  ;;  %2613 = vmatprep.mubr.bf16.mxu1 %v1647_v49 }
 0x314   :  { %v1510_v56 = vadd.f32 %v2540_v55, %v3080_v8  ;;  %v1501_v57 = vpop.f32.mrb[115].mxu0  ;;  %2614 = vmatmul.mubr.bf16.gmra.mrb[108].mxu1 %v1648_v48  ;;  %v1611_v59 = vmax.f32 %v1507_v52, 0.0 }
 0x315   :  { %v1502_v58 = vadd.f32 %v3080_v8, %v1501_v57  ;;  %v1609_v61 = vmax.f32 %v1499_v54, 0.0 }
 0x316   :  { %v1612_v60 = vmax.f32 %v1510_v56, 0.0 }
 0x317   :  { %v1610_v62 = vmax.f32 %v1502_v58, 0.0 }
 0x318   :  { %v1650_v63 = vpack.c.bf16 %v1612_v60, %v1611_v59 }
 0x319   :  { %v1649_v0 = vpack.c.bf16 %v1610_v62, %v1609_v61  ;;  %v2543_v1 = vpop.f32.mrb[116].mxu0 }
 0x31a   :  { %v1523_v2 = vadd.f32 %v2543_v1, %v3080_v8  ;;  %v1514_v3 = vpop.f32.mrb[117].mxu0 }
 0x31b   :  { %v1515_v4 = vadd.f32 %v3080_v8, %v1514_v3  ;;  %v2544_v5 = vpop.f32.mrb[118].mxu0  ;;  %2617 = vmatprep.mubr.bf16.mxu1 %v1649_v0 }
 0x31c   :  { %v1526_v6 = vadd.f32 %v2544_v5, %v3080_v8  ;;  %v1517_v7 = vpop.f32.mrb[119].mxu0  ;;  %2618 = vmatmul.mubr.bf16.gmra.mrb[112].mxu1 %v1650_v63  ;;  %v1615_v10 = vmax.f32 %v1523_v2, 0.0 }
 0x31d   :  { %v1518_v9 = vadd.f32 %v3080_v8, %v1517_v7  ;;  %v1613_v12 = vmax.f32 %v1515_v4, 0.0 }
 0x31e   :  { %v1616_v11 = vmax.f32 %v1526_v6, 0.0 }
 0x31f   :  { %v1614_v50 = vmax.f32 %v1518_v9, 0.0 }
 0x320   :  { %v1652_v13 = vpack.c.bf16 %v1616_v11, %v1615_v10 }
 0x321   :  { %v1651_v14 = vpack.c.bf16 %v1614_v50, %v1613_v12  ;;  %v2547_v15 = vpop.f32.mrb[120].mxu0 }
 0x322   :  { %v1539_v16 = vadd.f32 %v2547_v15, %v3080_v8  ;;  %v1530_v17 = vpop.f32.mrb[121].mxu0 }
 0x323   :  { %v1531_v18 = vadd.f32 %v3080_v8, %v1530_v17  ;;  %v2548_v19 = vpop.f32.mrb[122].mxu0  ;;  %2621 = vmatprep.mubr.bf16.mxu1 %v1651_v14 }
 0x324   :  { %v1542_v20 = vadd.f32 %v2548_v19, %v3080_v8  ;;  %v1533_v21 = vpop.f32.mrb[123].mxu0  ;;  %2622 = vmatmul.mubr.bf16.gmra.mrb[116].mxu1 %v1652_v13  ;;  %v1619_v23 = vmax.f32 %v1539_v16, 0.0 }
 0x325   :  { %v1534_v22 = vadd.f32 %v3080_v8, %v1533_v21  ;;  %v1617_v25 = vmax.f32 %v1531_v18, 0.0 }
 0x326   :  { %v1620_v24 = vmax.f32 %v1542_v20, 0.0 }
 0x327   :  { %v1618_v26 = vmax.f32 %v1534_v22, 0.0 }
 0x328   :  { %v1654_v27 = vpack.c.bf16 %v1620_v24, %v1619_v23 }
 0x329   :  { %v1653_v28 = vpack.c.bf16 %v1618_v26, %v1617_v25  ;;  %v2551_v29 = vpop.f32.mrb[124].mxu0 }
 0x32a   :  { %v1555_v30 = vadd.f32 %v2551_v29, %v3080_v8  ;;  %v1546_v31 = vpop.f32.mrb[125].mxu0 }
 0x32b   :  { %v1547_v32 = vadd.f32 %v3080_v8, %v1546_v31  ;;  %v2552_v33 = vpop.f32.mrb[126].mxu0  ;;  %2625 = vmatprep.mubr.bf16.mxu1 %v1653_v28 }
 0x32c   :  { %v1558_v34 = vadd.f32 %v2552_v33, %v3080_v8  ;;  %v1549_v35 = vpop.f32.mrb[127].mxu0  ;;  %2626 = vmatmul.mubr.bf16.gmra.mrb[120].mxu1 %v1654_v27  ;;  %v1623_v37 = vmax.f32 %v1555_v30, 0.0 }
 0x32d   :  { %v1550_v36 = vadd.f32 %v3080_v8, %v1549_v35  ;;  %v1621_v39 = vmax.f32 %v1547_v32, 0.0 }
 0x32e   :  { %v1624_v38 = vmax.f32 %v1558_v34, 0.0 }
 0x32f   :  { %v1622_v40 = vmax.f32 %v1550_v36, 0.0 }
 0x330   :  { %v1656_v41 = vpack.c.bf16 %v1624_v38, %v1623_v37 }
 0x331   :  { %v1655_v42 = vpack.c.bf16 %v1622_v40, %v1621_v39 }
 0x333   :  { %2629 = vmatprep.mubr.bf16.mxu1 %v1655_v42 }
 0x334   :  { %2630 = vmatmul.mubr.bf16.gmra.mrb[124].mxu1 %v1656_v41 }
 0x38f   :  { %v2571_v44 = vpop.f32.mrb[64].mxu1 }
 0x390   :  { %v1771_v45 = vadd.f32 %v2571_v44, %v3149_v43  ;;  %v1762_v46 = vpop.f32.mrb[65].mxu1 }
 0x391   :  { %v1763_v47 = vadd.f32 %v3149_v43, %v1762_v46  ;;  %v2572_v8 = vpop.f32.mrb[66].mxu1 }
 0x392   :  { %2019 = vst [vmem:[%s3416_s9 + $0x10] sm:$0xff] %v1771_v45  ;;  %v1774_v48 = vadd.f32 %v2572_v8, %v3149_v43  ;;  %v1765_v49 = vpop.f32.mrb[67].mxu1 }
 0x393   :  { %2017 = vst [vmem:[%s3416_s9] sm:$0xff] %v1763_v47  ;;  %v1766_v51 = vadd.f32 %v3149_v43, %v1765_v49 }
 0x394   :  { %2020 = vst [vmem:[%s3416_s9 + $0x18] sm:$0xff] %v1774_v48 }
 0x395   :  { %2018 = vst [vmem:[%s3416_s9 + $0x8] sm:$0xff] %v1766_v51 }
 0x397   :  { %v2575_v52 = vpop.f32.mrb[68].mxu1 }
 0x398   :  { %v1787_v53 = vadd.f32 %v2575_v52, %v3149_v43  ;;  %v1778_v54 = vpop.f32.mrb[69].mxu1 }
 0x399   :  { %v1779_v55 = vadd.f32 %v3149_v43, %v1778_v54  ;;  %v2576_v56 = vpop.f32.mrb[70].mxu1 }
 0x39a   :  { %2023 = vst [vmem:[%s3416_s9 + $0x30] sm:$0xff] %v1787_v53  ;;  %v1790_v57 = vadd.f32 %v2576_v56, %v3149_v43  ;;  %v1781_v58 = vpop.f32.mrb[71].mxu1 }
 0x39b   :  { %2021 = vst [vmem:[%s3416_s9 + $0x20] sm:$0xff] %v1779_v55  ;;  %v1782_v59 = vadd.f32 %v3149_v43, %v1781_v58 }
 0x39c   :  { %2024 = vst [vmem:[%s3416_s9 + $0x38] sm:$0xff] %v1790_v57 }
 0x39d   :  { %2022 = vst [vmem:[%s3416_s9 + $0x28] sm:$0xff] %v1782_v59 }
 0x39f   :  { %v2579_v60 = vpop.f32.mrb[72].mxu1 }
 0x3a0   :  { %v1803_v61 = vadd.f32 %v2579_v60, %v3149_v43  ;;  %v1794_v62 = vpop.f32.mrb[73].mxu1 }
 0x3a1   :  { %v1795_v63 = vadd.f32 %v3149_v43, %v1794_v62  ;;  %v2580_v0 = vpop.f32.mrb[74].mxu1 }
 0x3a2   :  { %2027 = vst [vmem:[%s3416_s9 + $0x50] sm:$0xff] %v1803_v61  ;;  %v1806_v1 = vadd.f32 %v2580_v0, %v3149_v43  ;;  %v1797_v2 = vpop.f32.mrb[75].mxu1 }
 0x3a3   :  { %2025 = vst [vmem:[%s3416_s9 + $0x40] sm:$0xff] %v1795_v63  ;;  %v1798_v3 = vadd.f32 %v3149_v43, %v1797_v2 }
 0x3a4   :  { %2028 = vst [vmem:[%s3416_s9 + $0x58] sm:$0xff] %v1806_v1 }
 0x3a5   :  { %2026 = vst [vmem:[%s3416_s9 + $0x48] sm:$0xff] %v1798_v3 }
 0x3a7   :  { %v2583_v4 = vpop.f32.mrb[76].mxu1 }
 0x3a8   :  { %v1819_v5 = vadd.f32 %v2583_v4, %v3149_v43  ;;  %v1810_v6 = vpop.f32.mrb[77].mxu1 }
 0x3a9   :  { %v1811_v7 = vadd.f32 %v3149_v43, %v1810_v6  ;;  %v2584_v9 = vpop.f32.mrb[78].mxu1 }
 0x3aa   :  { %2031 = vst [vmem:[%s3416_s9 + $0x70] sm:$0xff] %v1819_v5  ;;  %v1822_v10 = vadd.f32 %v2584_v9, %v3149_v43  ;;  %v1813_v11 = vpop.f32.mrb[79].mxu1 }
 0x3ab   :  { %2029 = vst [vmem:[%s3416_s9 + $0x60] sm:$0xff] %v1811_v7  ;;  %v1814_v12 = vadd.f32 %v3149_v43, %v1813_v11 }
 0x3ac   :  { %2032 = vst [vmem:[%s3416_s9 + $0x78] sm:$0xff] %v1822_v10 }
 0x3ad   :  { %2030 = vst [vmem:[%s3416_s9 + $0x68] sm:$0xff] %v1814_v12 }
 0x3af   :  { %v2587_v50 = vpop.f32.mrb[80].mxu1 }
 0x3b0   :  { %v1835_v13 = vadd.f32 %v2587_v50, %v3149_v43  ;;  %v1826_v14 = vpop.f32.mrb[81].mxu1 }
 0x3b1   :  { %v1827_v15 = vadd.f32 %v3149_v43, %v1826_v14  ;;  %v2588_v16 = vpop.f32.mrb[82].mxu1 }
 0x3b2   :  { %2035 = vst [vmem:[%s3416_s9 + $0x90] sm:$0xff] %v1835_v13  ;;  %v1838_v17 = vadd.f32 %v2588_v16, %v3149_v43  ;;  %v1829_v18 = vpop.f32.mrb[83].mxu1 }
 0x3b3   :  { %2033 = vst [vmem:[%s3416_s9 + $0x80] sm:$0xff] %v1827_v15  ;;  %v1830_v19 = vadd.f32 %v3149_v43, %v1829_v18 }
 0x3b4   :  { %2036 = vst [vmem:[%s3416_s9 + $0x98] sm:$0xff] %v1838_v17 }
 0x3b5   :  { %2034 = vst [vmem:[%s3416_s9 + $0x88] sm:$0xff] %v1830_v19 }
 0x3b7   :  { %v2591_v20 = vpop.f32.mrb[84].mxu1 }
 0x3b8   :  { %v1851_v21 = vadd.f32 %v2591_v20, %v3149_v43  ;;  %v1842_v22 = vpop.f32.mrb[85].mxu1 }
 0x3b9   :  { %v1843_v23 = vadd.f32 %v3149_v43, %v1842_v22  ;;  %v2592_v24 = vpop.f32.mrb[86].mxu1 }
 0x3ba   :  { %2039 = vst [vmem:[%s3416_s9 + $0xb0] sm:$0xff] %v1851_v21  ;;  %v1854_v25 = vadd.f32 %v2592_v24, %v3149_v43  ;;  %v1845_v26 = vpop.f32.mrb[87].mxu1 }
 0x3bb   :  { %2037 = vst [vmem:[%s3416_s9 + $0xa0] sm:$0xff] %v1843_v23  ;;  %v1846_v27 = vadd.f32 %v3149_v43, %v1845_v26 }
 0x3bc   :  { %2040 = vst [vmem:[%s3416_s9 + $0xb8] sm:$0xff] %v1854_v25 }
 0x3bd   :  { %2038 = vst [vmem:[%s3416_s9 + $0xa8] sm:$0xff] %v1846_v27 }
 0x3bf   :  { %v2595_v28 = vpop.f32.mrb[88].mxu1 }
 0x3c0   :  { %v1867_v29 = vadd.f32 %v2595_v28, %v3149_v43  ;;  %v1858_v30 = vpop.f32.mrb[89].mxu1 }
 0x3c1   :  { %v1859_v31 = vadd.f32 %v3149_v43, %v1858_v30  ;;  %v2596_v32 = vpop.f32.mrb[90].mxu1 }
 0x3c2   :  { %2043 = vst [vmem:[%s3416_s9 + $0xd0] sm:$0xff] %v1867_v29  ;;  %v1870_v33 = vadd.f32 %v2596_v32, %v3149_v43  ;;  %v1861_v34 = vpop.f32.mrb[91].mxu1 }
 0x3c3   :  { %2041 = vst [vmem:[%s3416_s9 + $0xc0] sm:$0xff] %v1859_v31  ;;  %v1862_v35 = vadd.f32 %v3149_v43, %v1861_v34 }
 0x3c4   :  { %2044 = vst [vmem:[%s3416_s9 + $0xd8] sm:$0xff] %v1870_v33 }
 0x3c5   :  { %2042 = vst [vmem:[%s3416_s9 + $0xc8] sm:$0xff] %v1862_v35 }
 0x3c7   :  { %v2599_v36 = vpop.f32.mrb[92].mxu1 }
 0x3c8   :  { %v1883_v37 = vadd.f32 %v2599_v36, %v3149_v43  ;;  %v1874_v38 = vpop.f32.mrb[93].mxu1 }
 0x3c9   :  { %v1875_v39 = vadd.f32 %v3149_v43, %v1874_v38  ;;  %v2600_v40 = vpop.f32.mrb[94].mxu1 }
 0x3ca   :  { %2047 = vst [vmem:[%s3416_s9 + $0xf0] sm:$0xff] %v1883_v37  ;;  %v1886_v41 = vadd.f32 %v2600_v40, %v3149_v43  ;;  %v1877_v42 = vpop.f32.mrb[95].mxu1 }
 0x3cb   :  { %2045 = vst [vmem:[%s3416_s9 + $0xe0] sm:$0xff] %v1875_v39  ;;  %v1878_v44 = vadd.f32 %v3149_v43, %v1877_v42 }
 0x3cc   :  { %2048 = vst [vmem:[%s3416_s9 + $0xf8] sm:$0xff] %v1886_v41 }
 0x3cd   :  { %2046 = vst [vmem:[%s3416_s9 + $0xe8] sm:$0xff] %v1878_v44 }
 0x3cf   :  { %v2603_v45 = vpop.f32.mrb[96].mxu1 }
 0x3d0   :  { %v1899_v46 = vadd.f32 %v2603_v45, %v3149_v43  ;;  %v1890_v47 = vpop.f32.mrb[97].mxu1 }
 0x3d1   :  { %v1891_v8 = vadd.f32 %v3149_v43, %v1890_v47  ;;  %v2604_v48 = vpop.f32.mrb[98].mxu1 }
 0x3d2   :  { %2051 = vst [vmem:[%s3416_s9 + $0x110] sm:$0xff] %v1899_v46  ;;  %v1902_v49 = vadd.f32 %v2604_v48, %v3149_v43  ;;  %v1893_v51 = vpop.f32.mrb[99].mxu1 }
 0x3d3   :  { %2049 = vst [vmem:[%s3416_s9 + $0x100] sm:$0xff] %v1891_v8  ;;  %v1894_v52 = vadd.f32 %v3149_v43, %v1893_v51 }
 0x3d4   :  { %2052 = vst [vmem:[%s3416_s9 + $0x118] sm:$0xff] %v1902_v49 }
 0x3d5   :  { %2050 = vst [vmem:[%s3416_s9 + $0x108] sm:$0xff] %v1894_v52 }
 0x3d7   :  { %v2607_v53 = vpop.f32.mrb[100].mxu1 }
 0x3d8   :  { %v1915_v54 = vadd.f32 %v2607_v53, %v3149_v43  ;;  %v1906_v55 = vpop.f32.mrb[101].mxu1 }
 0x3d9   :  { %v1907_v56 = vadd.f32 %v3149_v43, %v1906_v55  ;;  %v2608_v57 = vpop.f32.mrb[102].mxu1 }
 0x3da   :  { %2055 = vst [vmem:[%s3416_s9 + $0x130] sm:$0xff] %v1915_v54  ;;  %v1918_v58 = vadd.f32 %v2608_v57, %v3149_v43  ;;  %v1909_v59 = vpop.f32.mrb[103].mxu1 }
 0x3db   :  { %2053 = vst [vmem:[%s3416_s9 + $0x120] sm:$0xff] %v1907_v56  ;;  %v1910_v60 = vadd.f32 %v3149_v43, %v1909_v59 }
 0x3dc   :  { %2056 = vst [vmem:[%s3416_s9 + $0x138] sm:$0xff] %v1918_v58 }
 0x3dd   :  { %2054 = vst [vmem:[%s3416_s9 + $0x128] sm:$0xff] %v1910_v60 }
 0x3df   :  { %v2611_v61 = vpop.f32.mrb[104].mxu1 }
 0x3e0   :  { %v1931_v62 = vadd.f32 %v2611_v61, %v3149_v43  ;;  %v1922_v63 = vpop.f32.mrb[105].mxu1 }
 0x3e1   :  { %v1923_v0 = vadd.f32 %v3149_v43, %v1922_v63  ;;  %v2612_v1 = vpop.f32.mrb[106].mxu1 }
 0x3e2   :  { %2059 = vst [vmem:[%s3416_s9 + $0x150] sm:$0xff] %v1931_v62  ;;  %v1934_v2 = vadd.f32 %v2612_v1, %v3149_v43  ;;  %v1925_v3 = vpop.f32.mrb[107].mxu1 }
 0x3e3   :  { %2057 = vst [vmem:[%s3416_s9 + $0x140] sm:$0xff] %v1923_v0  ;;  %v1926_v4 = vadd.f32 %v3149_v43, %v1925_v3 }
 0x3e4   :  { %2060 = vst [vmem:[%s3416_s9 + $0x158] sm:$0xff] %v1934_v2 }
 0x3e5   :  { %2058 = vst [vmem:[%s3416_s9 + $0x148] sm:$0xff] %v1926_v4 }
 0x3e7   :  { %v2615_v5 = vpop.f32.mrb[108].mxu1 }
 0x3e8   :  { %v1947_v6 = vadd.f32 %v2615_v5, %v3149_v43  ;;  %v1938_v7 = vpop.f32.mrb[109].mxu1 }
 0x3e9   :  { %v1939_v9 = vadd.f32 %v3149_v43, %v1938_v7  ;;  %v2616_v10 = vpop.f32.mrb[110].mxu1 }
 0x3ea   :  { %2063 = vst [vmem:[%s3416_s9 + $0x170] sm:$0xff] %v1947_v6  ;;  %v1950_v11 = vadd.f32 %v2616_v10, %v3149_v43  ;;  %v1941_v12 = vpop.f32.mrb[111].mxu1 }
 0x3eb   :  { %2061 = vst [vmem:[%s3416_s9 + $0x160] sm:$0xff] %v1939_v9  ;;  %v1942_v50 = vadd.f32 %v3149_v43, %v1941_v12 }
 0x3ec   :  { %2064 = vst [vmem:[%s3416_s9 + $0x178] sm:$0xff] %v1950_v11 }
 0x3ed   :  { %2062 = vst [vmem:[%s3416_s9 + $0x168] sm:$0xff] %v1942_v50 }
 0x3ef   :  { %v2619_v13 = vpop.f32.mrb[112].mxu1 }
 0x3f0   :  { %v1963_v14 = vadd.f32 %v2619_v13, %v3149_v43  ;;  %v1954_v15 = vpop.f32.mrb[113].mxu1 }
 0x3f1   :  { %v1955_v16 = vadd.f32 %v3149_v43, %v1954_v15  ;;  %v2620_v17 = vpop.f32.mrb[114].mxu1 }
 0x3f2   :  { %2067 = vst [vmem:[%s3416_s9 + $0x190] sm:$0xff] %v1963_v14  ;;  %v1966_v18 = vadd.f32 %v2620_v17, %v3149_v43  ;;  %v1957_v19 = vpop.f32.mrb[115].mxu1 }
 0x3f3   :  { %2065 = vst [vmem:[%s3416_s9 + $0x180] sm:$0xff] %v1955_v16  ;;  %v1958_v20 = vadd.f32 %v3149_v43, %v1957_v19 }
 0x3f4   :  { %2068 = vst [vmem:[%s3416_s9 + $0x198] sm:$0xff] %v1966_v18 }
 0x3f5   :  { %2066 = vst [vmem:[%s3416_s9 + $0x188] sm:$0xff] %v1958_v20 }
 0x3f7   :  { %v2623_v21 = vpop.f32.mrb[116].mxu1 }
 0x3f8   :  { %v1979_v22 = vadd.f32 %v2623_v21, %v3149_v43  ;;  %v1970_v23 = vpop.f32.mrb[117].mxu1 }
 0x3f9   :  { %v1971_v24 = vadd.f32 %v3149_v43, %v1970_v23  ;;  %v2624_v25 = vpop.f32.mrb[118].mxu1 }
 0x3fa   :  { %2071 = vst [vmem:[%s3416_s9 + $0x1b0] sm:$0xff] %v1979_v22  ;;  %v1982_v26 = vadd.f32 %v2624_v25, %v3149_v43  ;;  %v1973_v27 = vpop.f32.mrb[119].mxu1 }
 0x3fb   :  { %2069 = vst [vmem:[%s3416_s9 + $0x1a0] sm:$0xff] %v1971_v24  ;;  %v1974_v28 = vadd.f32 %v3149_v43, %v1973_v27 }
 0x3fc   :  { %2072 = vst [vmem:[%s3416_s9 + $0x1b8] sm:$0xff] %v1982_v26 }
 0x3fd   :  { %2070 = vst [vmem:[%s3416_s9 + $0x1a8] sm:$0xff] %v1974_v28 }
 0x3ff   :  { %v2627_v29 = vpop.f32.mrb[120].mxu1 }
 0x400   :  { %v1995_v30 = vadd.f32 %v2627_v29, %v3149_v43  ;;  %v1986_v31 = vpop.f32.mrb[121].mxu1 }
 0x401   :  { %v1987_v32 = vadd.f32 %v3149_v43, %v1986_v31  ;;  %v2628_v33 = vpop.f32.mrb[122].mxu1 }
 0x402   :  { %2075 = vst [vmem:[%s3416_s9 + $0x1d0] sm:$0xff] %v1995_v30  ;;  %v1998_v34 = vadd.f32 %v2628_v33, %v3149_v43  ;;  %v1989_v35 = vpop.f32.mrb[123].mxu1 }
 0x403   :  { %2073 = vst [vmem:[%s3416_s9 + $0x1c0] sm:$0xff] %v1987_v32  ;;  %v1990_v36 = vadd.f32 %v3149_v43, %v1989_v35 }
 0x404   :  { %2076 = vst [vmem:[%s3416_s9 + $0x1d8] sm:$0xff] %v1998_v34 }
 0x405   :  { %2074 = vst [vmem:[%s3416_s9 + $0x1c8] sm:$0xff] %v1990_v36 }
 0x407   :  { %v2631_v37 = vpop.f32.mrb[124].mxu1 }
 0x408   :  { %v2011_v38 = vadd.f32 %v2631_v37, %v3149_v43  ;;  %v2002_v39 = vpop.f32.mrb[125].mxu1 }
 0x409   :  { %v2003_v40 = vadd.f32 %v3149_v43, %v2002_v39  ;;  %v2632_v41 = vpop.f32.mrb[126].mxu1 }
 0x40a   :  { %2079 = vst [vmem:[%s3416_s9 + $0x1f0] sm:$0xff] %v2011_v38  ;;  %v2014_v42 = vadd.f32 %v2632_v41, %v3149_v43  ;;  %v2005_v44 = vpop.f32.mrb[127].mxu1 }
 0x40b   :  { %2077 = vst [vmem:[%s3416_s9 + $0x1e0] sm:$0xff] %v2003_v40  ;;  %v2006_v45 = vadd.f32 %v3149_v43, %v2005_v44 }
 0x40c   :  { %2080 = vst [vmem:[%s3416_s9 + $0x1f8] sm:$0xff] %v2014_v42 }
 0x40d   :  { %2078 = vst [vmem:[%s3416_s9 + $0x1e8] sm:$0xff] %v2006_v45 }

</bundles_post_ra>
